<compile_context>
chip_gen: v7x
topology: tpu7x:2x2x1
jax: 0.10.0
libtpu: 0.0.40
codegen_flags: <defaults>
</compile_context>

<pallas_src>
import functools

import jax
import jax.numpy as jnp
import numpy as np
from jax.experimental import pallas as pl
from jax.experimental.pallas import tpu as pltpu


def _layer_norm(x, gamma, beta, eps=1e-6):
    mu = jnp.mean(x, axis=-1, keepdims=True)
    var = jnp.mean(jnp.square(x - mu), axis=-1, keepdims=True)
    return (x - mu) * jax.lax.rsqrt(var + eps) * gamma + beta


def _dot_nt(a, b):
    """a:(m,d) x b:(n,d) -> (m,n), contracting the last dim of both (no transpose op)."""
    return jax.lax.dot_general(a, b, (((1,), (1,)), ((), ())),
                               preferred_element_type=jnp.float32)


def encoder_stack_kernel(x_ref, wqkv_ref, wo_ref, ln1_g_ref, ln1_b_ref,
                         w1_ref, b1_ref, w2_ref, b2_ref, ln2_g_ref, ln2_b_ref,
                         o_ref, act_ref, *, n_head, d_k, d_v, ffn_chunk):
    layer = pl.program_id(1)

    # Layer 0: load this batch element's activation into the resident VMEM scratch.
    # It stays on-chip across all layers of the stack.
    @pl.when(layer == 0)
    def _():
        act_ref[...] = x_ref[0].astype(jnp.float32)

    x = act_ref[...]                                   # (S, D) f32
    S, D = x.shape
    x_bf = x.astype(jnp.bfloat16)

    # ---- Multi-head self-attention (mask=None, eval-mode dropout) ----
    # Single fused lane-dense projection: (S, D) @ (D, H*(2*d_k + d_v)).
    qkv = jnp.dot(x_bf, wqkv_ref[0], preferred_element_type=jnp.float32)

    k_off = n_head * d_k
    v_off = 2 * n_head * d_k
    scale = 1.0 / (d_k ** 0.5)
    q_all = qkv[:, :k_off] * scale                     # scale q once (S*H*d_k), not scores (S*S)
    wo = wo_ref[0]                                     # (H*d_v, D) bf16

    # TODO(synk): for long sequences, replace the dense (S,S) scores with a flash-style
    # KV-tiled online softmax to keep VMEM at O(S * tile).
    attn_out = jnp.zeros((S, D), jnp.float32)
    for h in range(n_head):                            # n_head is small & static -> unrolled
        q_h = q_all[:, h * d_k:(h + 1) * d_k]
        k_h = qkv[:, k_off + h * d_k: k_off + (h + 1) * d_k]
        v_h = qkv[:, v_off + h * d_v: v_off + (h + 1) * d_v]

        s = _dot_nt(q_h.astype(jnp.bfloat16), k_h.astype(jnp.bfloat16))    # (S, S) f32
        s = s - jnp.max(s, axis=-1, keepdims=True)
        p = jnp.exp(s)
        denom = jnp.sum(p, axis=-1, keepdims=True)
        # Un-normalized PV matmul; normalize the (S, d_v) context instead of the (S, S) probs.
        ctx = jnp.dot(p.astype(jnp.bfloat16), v_h.astype(jnp.bfloat16),
                      preferred_element_type=jnp.float32)                  # (S, d_v)
        ctx = ctx * pl.reciprocal(denom, approx=True)
        # Per-head slice of the output projection keeps N = D lane-dense and reduces the
        # heads in place (no concatenate of d_v-wide chunks).
        attn_out = attn_out + jnp.dot(ctx.astype(jnp.bfloat16),
                                      wo[h * d_v:(h + 1) * d_v, :],
                                      preferred_element_type=jnp.float32)

    y = _layer_norm(attn_out + x, ln1_g_ref[0], ln1_b_ref[0])              # post-LN, f32

    # ---- Position-wise feed-forward, chunked over d_inner ----
    w1 = w1_ref[0]            # (D, d_inner) bf16
    w2 = w2_ref[0]            # (d_inner, D) bf16
    b1 = b1_ref[0]            # (1, d_inner) f32
    b2 = b2_ref[0]            # (1, D)       f32
    d_inner = w1.shape[1]

    y_bf = y.astype(jnp.bfloat16)
    z = jnp.zeros((S, D), jnp.float32)
    for c0 in range(0, d_inner, ffn_chunk):
        c1 = min(c0 + ffn_chunk, d_inner)
        h1 = jnp.maximum(
            jnp.dot(y_bf, w1[:, c0:c1], preferred_element_type=jnp.float32) + b1[:, c0:c1],
            0.0)
        z = z + jnp.dot(h1.astype(jnp.bfloat16), w2[c0:c1, :],
                        preferred_element_type=jnp.float32)
    z = _layer_norm(z + b2 + y, ln2_g_ref[0], ln2_b_ref[0])

    act_ref[...] = z

    @pl.when(layer == pl.num_programs(1) - 1)
    def _():
        o_ref[0] = z.astype(o_ref.dtype)


def transformer_encoder(src, packed, *, n_head, d_k, d_v, ffn_chunk=512):
    """Forward of TrandformerEncoder (mask=None, return_attns=False) -> (enc_output,)."""
    B, S, D = src.shape
    names = ["wqkv", "wo", "ln1_g", "ln1_b", "w1", "b1", "w2", "b2", "ln2_g", "ln2_b"]
    weights = [packed[n] for n in names]
    n_layers = packed["wqkv"].shape[0]
    d_inner = packed["w1"].shape[-1]

    kernel = functools.partial(encoder_stack_kernel, n_head=n_head, d_k=d_k, d_v=d_v,
                               ffn_chunk=min(ffn_chunk, d_inner))

    def w_spec(arr):
        # Per-layer weight block; index only on the (sequential) layer axis so the pipeline
        # prefetches layer l+1's weights while layer l computes.
        return pl.BlockSpec((1,) + arr.shape[1:], lambda b, l: (l, 0, 0))

    enc_output = pl.pallas_call(
        kernel,
        out_shape=jax.ShapeDtypeStruct((B, S, D), src.dtype),
        grid=(B, n_layers),
        in_specs=[pl.BlockSpec((1, S, D), lambda b, l: (b, 0, 0))]
                 + [w_spec(w) for w in weights],
        out_specs=pl.BlockSpec((1, S, D), lambda b, l: (b, 0, 0)),
        scratch_shapes=[pltpu.VMEM((S, D), jnp.float32)],
        compiler_params=pltpu.CompilerParams(
            dimension_semantics=("parallel", "arbitrary"),
            vmem_limit_bytes=48 * 1024 * 1024),
    )(src, *weights)
    return (enc_output,)


def transformer_encoder_ref(src, packed, *, n_head, d_k, d_v):
    """Pure-JAX reference (f32 math, same bf16-quantized matmul weights)."""
    x = src.astype(jnp.float32)
    n_layers = packed["wqkv"].shape[0]
    k_off = n_head * d_k
    v_off = 2 * n_head * d_k
    for l in range(n_layers):
        wqkv = packed["wqkv"][l].astype(jnp.float32)
        wo = packed["wo"][l].astype(jnp.float32)
        w1 = packed["w1"][l].astype(jnp.float32)
        w2 = packed["w2"][l].astype(jnp.float32)
        b1, b2 = packed["b1"][l], packed["b2"][l]

        qkv = x @ wqkv
        heads = []
        for h in range(n_head):
            q = qkv[..., h * d_k:(h + 1) * d_k] / (d_k ** 0.5)
            k = qkv[..., k_off + h * d_k:k_off + (h + 1) * d_k]
            v = qkv[..., v_off + h * d_v:v_off + (h + 1) * d_v]
            s = jnp.einsum('bqd,bkd->bqk', q, k)
            p = jax.nn.softmax(s, axis=-1)
            heads.append(jnp.einsum('bqk,bkd->bqd', p, v))
        attn = jnp.concatenate(heads, axis=-1) @ wo
        y = _layer_norm(attn + x, packed["ln1_g"][l], packed["ln1_b"][l])

        h1 = jnp.maximum(y @ w1 + b1, 0.0)
        z = h1 @ w2 + b2
        x = _layer_norm(z + y, packed["ln2_g"][l], packed["ln2_b"][l])
    return x


def init_layer_params(key, d_model, d_inner, n_head, d_k, d_v):
    ks = jax.random.split(key, 6)
    std = 0.02
    return {
        "wq": std * jax.random.normal(ks[0], (d_model, n_head * d_k), jnp.float32),
        "wk": std * jax.random.normal(ks[1], (d_model, n_head * d_k), jnp.float32),
        "wv": std * jax.random.normal(ks[2], (d_model, n_head * d_v), jnp.float32),
        "wo": std * jax.random.normal(ks[3], (n_head * d_v, d_model), jnp.float32),
        "ln1_g": jnp.ones((1, d_model), jnp.float32),
        "ln1_b": jnp.zeros((1, d_model), jnp.float32),
        "w1": std * jax.random.normal(ks[4], (d_model, d_inner), jnp.float32),
        "b1": jnp.zeros((1, d_inner), jnp.float32),
        "w2": std * jax.random.normal(ks[5], (d_inner, d_model), jnp.float32),
        "b2": jnp.zeros((1, d_model), jnp.float32),
        "ln2_g": jnp.ones((1, d_model), jnp.float32),
        "ln2_b": jnp.zeros((1, d_model), jnp.float32),
    }


def pack_params(layer_params, matmul_dtype=jnp.bfloat16):
    """Stack per-layer params along a leading layer axis; fuse wq|wk|wv; matmul weights in bf16."""
    def stack(name, dtype=jnp.float32):
        return jnp.stack([p[name] for p in layer_params]).astype(dtype)

    wqkv = jnp.stack([jnp.concatenate([p["wq"], p["wk"], p["wv"]], axis=-1)
                      for p in layer_params]).astype(matmul_dtype)
    return {
        "wqkv": wqkv,
        "wo": stack("wo", matmul_dtype),
        "ln1_g": stack("ln1_g"), "ln1_b": stack("ln1_b"),
        "w1": stack("w1", matmul_dtype), "b1": stack("b1"),
        "w2": stack("w2", matmul_dtype), "b2": stack("b2"),
        "ln2_g": stack("ln2_g"), "ln2_b": stack("ln2_b"),
    }


if __name__ == "__main__":
    # Small, module-consistent shapes.
    n_layers, n_head, d_k, d_v = 2, 4, 16, 16
    d_model, d_inner = 64, 128
    B, S = 2, 16

    key = jax.random.PRNGKey(0)
    key_x, key_p = jax.random.split(key)
    src = jax.random.normal(key_x, (B, S, d_model), jnp.float32)

    layer_keys = jax.random.split(key_p, n_layers)
    layer_params = [init_layer_params(k, d_model, d_inner, n_head, d_k, d_v)
                    for k in layer_keys]
    packed = pack_params(layer_params)

    (enc_output,) = transformer_encoder(src, packed, n_head=n_head, d_k=d_k, d_v=d_v)
    jax.block_until_ready(enc_output)

    assert enc_output.shape == (B, S, d_model)
    assert bool(jnp.all(jnp.isfinite(enc_output)))

    ref = transformer_encoder_ref(src, packed, n_head=n_head, d_k=d_k, d_v=d_v)
    np.testing.assert_allclose(np.asarray(enc_output), np.asarray(ref),
                               rtol=5e-2, atol=5e-2)
    print("KERNEL_OK")
</pallas_src>

<mosaic_0001>
module attributes {stable_mosaic.version = 11 : i64} {
  func.func @encoder_stack_kernel(%arg0: i32, %arg1: i32, %arg2: memref<1x16x64xf32, #tpu.memory_space<vmem>>, %arg3: memref<1x64x192xbf16, #tpu.memory_space<vmem>>, %arg4: memref<1x64x64xbf16, #tpu.memory_space<vmem>>, %arg5: memref<1x1x64xf32, #tpu.memory_space<vmem>>, %arg6: memref<1x1x64xf32, #tpu.memory_space<vmem>>, %arg7: memref<1x64x128xbf16, #tpu.memory_space<vmem>>, %arg8: memref<1x1x128xf32, #tpu.memory_space<vmem>>, %arg9: memref<1x128x64xbf16, #tpu.memory_space<vmem>>, %arg10: memref<1x1x64xf32, #tpu.memory_space<vmem>>, %arg11: memref<1x1x64xf32, #tpu.memory_space<vmem>>, %arg12: memref<1x1x64xf32, #tpu.memory_space<vmem>>, %arg13: memref<1x16x64xf32, #tpu.memory_space<vmem>>, %arg14: memref<16x64xf32, #tpu.memory_space<vmem>>) attributes {dimension_semantics = [#tpu.dimension_semantics<parallel>, #tpu.dimension_semantics<arbitrary>], iteration_bounds = array<i64: 2, 2>, scalar_prefetch = 0 : i64, scratch_operands = 1 : i64, tpu.core_type = #tpu.core_type<tc>, window_params = [{transform_indices = @transform_0, window_bounds = array<i64: 1, 16, 64>}, {transform_indices = @transform_1, window_bounds = array<i64: 1, 64, 192>}, {transform_indices = @transform_2, window_bounds = array<i64: 1, 64, 64>}, {transform_indices = @transform_3, window_bounds = array<i64: 1, 1, 64>}, {transform_indices = @transform_4, window_bounds = array<i64: 1, 1, 64>}, {transform_indices = @transform_5, window_bounds = array<i64: 1, 64, 128>}, {transform_indices = @transform_6, window_bounds = array<i64: 1, 1, 128>}, {transform_indices = @transform_7, window_bounds = array<i64: 1, 128, 64>}, {transform_indices = @transform_8, window_bounds = array<i64: 1, 1, 64>}, {transform_indices = @transform_9, window_bounds = array<i64: 1, 1, 64>}, {transform_indices = @transform_10, window_bounds = array<i64: 1, 1, 64>}, {transform_indices = @transform_11, window_bounds = array<i64: 1, 16, 64>}]} {
    %c0_i32 = arith.constant 0 : i32
    %0 = arith.cmpi eq, %arg1, %c0_i32 : i32
    %1 = arith.extui %0 : i1 to i32
    %c0_i32_0 = arith.constant 0 : i32
    %2 = arith.cmpi ne, %1, %c0_i32_0 : i32
    scf.if %2 {
      %c0_71 = arith.constant 0 : index
      %c0_72 = arith.constant 0 : index
      %c0_73 = arith.constant 0 : index
      %184 = vector.load %arg2[%c0_71, %c0_72, %c0_73] : memref<1x16x64xf32, #tpu.memory_space<vmem>>, vector<1x16x64xf32>
      %185 = vector.shape_cast %184 : vector<1x16x64xf32> to vector<16x64xf32>
      %c0_74 = arith.constant 0 : index
      %c0_75 = arith.constant 0 : index
      %186 = vector.load %arg14[%c0_74, %c0_75] : memref<16x64xf32, #tpu.memory_space<vmem>>, vector<16x64xf32>
      tpu.vector_store %arg14[%c0_74, %c0_75], %185 {strides = array<i32>} : memref<16x64xf32, #tpu.memory_space<vmem>>, vector<16x64xf32>,
    } else {
    }
    %c0 = arith.constant 0 : index
    %c0_1 = arith.constant 0 : index
    %3 = vector.load %arg14[%c0, %c0_1] : memref<16x64xf32, #tpu.memory_space<vmem>>, vector<16x64xf32>
    %4 = arith.truncf %3 : vector<16x64xf32> to vector<16x64xbf16>
    %c0_2 = arith.constant 0 : index
    %c0_3 = arith.constant 0 : index
    %c0_4 = arith.constant 0 : index
    %5 = vector.load %arg3[%c0_2, %c0_3, %c0_4] : memref<1x64x192xbf16, #tpu.memory_space<vmem>>, vector<1x64x192xbf16>
    %6 = vector.shape_cast %5 : vector<1x64x192xbf16> to vector<64x192xbf16>
    %cst = arith.constant dense<0.000000e+00> : vector<16x192xf32>
    %7 = tpu.matmul %4, %6, %cst {dimension_numbers = #tpu.dot_dimension_numbers<[1], [0], [0], [1], [0, 0, 1, 1], [], []>} : vector<16x64xbf16>, vector<64x192xbf16>, vector<16x192xf32> -> vector<16x192xf32>
    %8 = vector.extract_strided_slice %7 {offsets = [0, 0], sizes = [16, 64], strides = [1, 1]} : vector<16x192xf32> to vector<16x64xf32>
    %cst_5 = arith.constant 2.500000e-01 : f32
    %9 = vector.broadcast %cst_5 : f32 to vector<16x64xf32>
    %10 = arith.mulf %8, %9 : vector<16x64xf32>
    %c0_6 = arith.constant 0 : index
    %c0_7 = arith.constant 0 : index
    %c0_8 = arith.constant 0 : index
    %11 = vector.load %arg4[%c0_6, %c0_7, %c0_8] : memref<1x64x64xbf16, #tpu.memory_space<vmem>>, vector<1x64x64xbf16>
    %12 = vector.shape_cast %11 : vector<1x64x64xbf16> to vector<64x64xbf16>
    %cst_9 = arith.constant 0.000000e+00 : f32
    %13 = vector.broadcast %cst_9 : f32 to vector<16x64xf32>
    %14 = vector.extract_strided_slice %10 {offsets = [0, 0], sizes = [16, 16], strides = [1, 1]} : vector<16x64xf32> to vector<16x16xf32>
    %15 = vector.extract_strided_slice %7 {offsets = [0, 64], sizes = [16, 16], strides = [1, 1]} : vector<16x192xf32> to vector<16x16xf32>
    %16 = vector.extract_strided_slice %7 {offsets = [0, 128], sizes = [16, 16], strides = [1, 1]} : vector<16x192xf32> to vector<16x16xf32>
    %17 = arith.truncf %14 : vector<16x16xf32> to vector<16x16xbf16>
    %18 = arith.truncf %15 : vector<16x16xf32> to vector<16x16xbf16>
    %cst_10 = arith.constant dense<0.000000e+00> : vector<16x16xf32>
    %19 = tpu.matmul %17, %18, %cst_10 {dimension_numbers = #tpu.dot_dimension_numbers<[1], [1], [0], [0], [0, 0, 1, 0], [], []>} : vector<16x16xbf16>, vector<16x16xbf16>, vector<16x16xf32> -> vector<16x16xf32>
    %cst_11 = arith.constant dense<0xFF800000> : vector<16xf32>
    %20 = vector.multi_reduction <maximumf>, %19, %cst_11 [1] : vector<16x16xf32> to vector<16xf32>
    %21 = vector.shape_cast %20 : vector<16xf32> to vector<16x1xf32>
    %22 = vector.broadcast %21 : vector<16x1xf32> to vector<16x16xf32>
    %23 = arith.subf %19, %22 : vector<16x16xf32>
    %24 = math.exp %23 : vector<16x16xf32>
    %cst_12 = arith.constant dense<0.000000e+00> : vector<16xf32>
    %25 = vector.multi_reduction <add>, %24, %cst_12 [1] : vector<16x16xf32> to vector<16xf32>
    %26 = vector.shape_cast %25 : vector<16xf32> to vector<16x1xf32>
    %27 = arith.truncf %24 : vector<16x16xf32> to vector<16x16xbf16>
    %28 = arith.truncf %16 : vector<16x16xf32> to vector<16x16xbf16>
    %cst_13 = arith.constant dense<0.000000e+00> : vector<16x16xf32>
    %29 = tpu.matmul %27, %28, %cst_13 {dimension_numbers = #tpu.dot_dimension_numbers<[1], [0], [0], [1], [0, 0, 1, 1], [], []>} : vector<16x16xbf16>, vector<16x16xbf16>, vector<16x16xf32> -> vector<16x16xf32>
    %30 = tpu.reciprocal %26 {approx = true} : vector<16x1xf32> -> vector<16x1xf32>
    %31 = vector.broadcast %30 : vector<16x1xf32> to vector<16x16xf32>
    %32 = arith.mulf %29, %31 : vector<16x16xf32>
    %33 = arith.truncf %32 : vector<16x16xf32> to vector<16x16xbf16>
    %34 = vector.extract_strided_slice %12 {offsets = [0, 0], sizes = [16, 64], strides = [1, 1]} : vector<64x64xbf16> to vector<16x64xbf16>
    %cst_14 = arith.constant dense<0.000000e+00> : vector<16x64xf32>
    %35 = tpu.matmul %33, %34, %cst_14 {dimension_numbers = #tpu.dot_dimension_numbers<[1], [0], [0], [1], [0, 0, 1, 1], [], []>} : vector<16x16xbf16>, vector<16x64xbf16>, vector<16x64xf32> -> vector<16x64xf32>
    %36 = arith.addf %13, %35 : vector<16x64xf32>
    %37 = vector.extract_strided_slice %10 {offsets = [0, 16], sizes = [16, 16], strides = [1, 1]} : vector<16x64xf32> to vector<16x16xf32>
    %38 = vector.extract_strided_slice %7 {offsets = [0, 80], sizes = [16, 16], strides = [1, 1]} : vector<16x192xf32> to vector<16x16xf32>
    %39 = vector.extract_strided_slice %7 {offsets = [0, 144], sizes = [16, 16], strides = [1, 1]} : vector<16x192xf32> to vector<16x16xf32>
    %40 = arith.truncf %37 : vector<16x16xf32> to vector<16x16xbf16>
    %41 = arith.truncf %38 : vector<16x16xf32> to vector<16x16xbf16>
    %cst_15 = arith.constant dense<0.000000e+00> : vector<16x16xf32>
    %42 = tpu.matmul %40, %41, %cst_15 {dimension_numbers = #tpu.dot_dimension_numbers<[1], [1], [0], [0], [0, 0, 1, 0], [], []>} : vector<16x16xbf16>, vector<16x16xbf16>, vector<16x16xf32> -> vector<16x16xf32>
    %cst_16 = arith.constant dense<0xFF800000> : vector<16xf32>
    %43 = vector.multi_reduction <maximumf>, %42, %cst_16 [1] : vector<16x16xf32> to vector<16xf32>
    %44 = vector.shape_cast %43 : vector<16xf32> to vector<16x1xf32>
    %45 = vector.broadcast %44 : vector<16x1xf32> to vector<16x16xf32>
    %46 = arith.subf %42, %45 : vector<16x16xf32>
    %47 = math.exp %46 : vector<16x16xf32>
    %cst_17 = arith.constant dense<0.000000e+00> : vector<16xf32>
    %48 = vector.multi_reduction <add>, %47, %cst_17 [1] : vector<16x16xf32> to vector<16xf32>
    %49 = vector.shape_cast %48 : vector<16xf32> to vector<16x1xf32>
    %50 = arith.truncf %47 : vector<16x16xf32> to vector<16x16xbf16>
    %51 = arith.truncf %39 : vector<16x16xf32> to vector<16x16xbf16>
    %cst_18 = arith.constant dense<0.000000e+00> : vector<16x16xf32>
    %52 = tpu.matmul %50, %51, %cst_18 {dimension_numbers = #tpu.dot_dimension_numbers<[1], [0], [0], [1], [0, 0, 1, 1], [], []>} : vector<16x16xbf16>, vector<16x16xbf16>, vector<16x16xf32> -> vector<16x16xf32>
    %53 = tpu.reciprocal %49 {approx = true} : vector<16x1xf32> -> vector<16x1xf32>
    %54 = vector.broadcast %53 : vector<16x1xf32> to vector<16x16xf32>
    %55 = arith.mulf %52, %54 : vector<16x16xf32>
    %56 = arith.truncf %55 : vector<16x16xf32> to vector<16x16xbf16>
    %57 = vector.extract_strided_slice %12 {offsets = [16, 0], sizes = [16, 64], strides = [1, 1]} : vector<64x64xbf16> to vector<16x64xbf16>
    %cst_19 = arith.constant dense<0.000000e+00> : vector<16x64xf32>
    %58 = tpu.matmul %56, %57, %cst_19 {dimension_numbers = #tpu.dot_dimension_numbers<[1], [0], [0], [1], [0, 0, 1, 1], [], []>} : vector<16x16xbf16>, vector<16x64xbf16>, vector<16x64xf32> -> vector<16x64xf32>
    %59 = arith.addf %36, %58 : vector<16x64xf32>
    %60 = vector.extract_strided_slice %10 {offsets = [0, 32], sizes = [16, 16], strides = [1, 1]} : vector<16x64xf32> to vector<16x16xf32>
    %61 = vector.extract_strided_slice %7 {offsets = [0, 96], sizes = [16, 16], strides = [1, 1]} : vector<16x192xf32> to vector<16x16xf32>
    %62 = vector.extract_strided_slice %7 {offsets = [0, 160], sizes = [16, 16], strides = [1, 1]} : vector<16x192xf32> to vector<16x16xf32>
    %63 = arith.truncf %60 : vector<16x16xf32> to vector<16x16xbf16>
    %64 = arith.truncf %61 : vector<16x16xf32> to vector<16x16xbf16>
    %cst_20 = arith.constant dense<0.000000e+00> : vector<16x16xf32>
    %65 = tpu.matmul %63, %64, %cst_20 {dimension_numbers = #tpu.dot_dimension_numbers<[1], [1], [0], [0], [0, 0, 1, 0], [], []>} : vector<16x16xbf16>, vector<16x16xbf16>, vector<16x16xf32> -> vector<16x16xf32>
    %cst_21 = arith.constant dense<0xFF800000> : vector<16xf32>
    %66 = vector.multi_reduction <maximumf>, %65, %cst_21 [1] : vector<16x16xf32> to vector<16xf32>
    %67 = vector.shape_cast %66 : vector<16xf32> to vector<16x1xf32>
    %68 = vector.broadcast %67 : vector<16x1xf32> to vector<16x16xf32>
    %69 = arith.subf %65, %68 : vector<16x16xf32>
    %70 = math.exp %69 : vector<16x16xf32>
    %cst_22 = arith.constant dense<0.000000e+00> : vector<16xf32>
    %71 = vector.multi_reduction <add>, %70, %cst_22 [1] : vector<16x16xf32> to vector<16xf32>
    %72 = vector.shape_cast %71 : vector<16xf32> to vector<16x1xf32>
    %73 = arith.truncf %70 : vector<16x16xf32> to vector<16x16xbf16>
    %74 = arith.truncf %62 : vector<16x16xf32> to vector<16x16xbf16>
    %cst_23 = arith.constant dense<0.000000e+00> : vector<16x16xf32>
    %75 = tpu.matmul %73, %74, %cst_23 {dimension_numbers = #tpu.dot_dimension_numbers<[1], [0], [0], [1], [0, 0, 1, 1], [], []>} : vector<16x16xbf16>, vector<16x16xbf16>, vector<16x16xf32> -> vector<16x16xf32>
    %76 = tpu.reciprocal %72 {approx = true} : vector<16x1xf32> -> vector<16x1xf32>
    %77 = vector.broadcast %76 : vector<16x1xf32> to vector<16x16xf32>
    %78 = arith.mulf %75, %77 : vector<16x16xf32>
    %79 = arith.truncf %78 : vector<16x16xf32> to vector<16x16xbf16>
    %80 = vector.extract_strided_slice %12 {offsets = [32, 0], sizes = [16, 64], strides = [1, 1]} : vector<64x64xbf16> to vector<16x64xbf16>
    %cst_24 = arith.constant dense<0.000000e+00> : vector<16x64xf32>
    %81 = tpu.matmul %79, %80, %cst_24 {dimension_numbers = #tpu.dot_dimension_numbers<[1], [0], [0], [1], [0, 0, 1, 1], [], []>} : vector<16x16xbf16>, vector<16x64xbf16>, vector<16x64xf32> -> vector<16x64xf32>
    %82 = arith.addf %59, %81 : vector<16x64xf32>
    %83 = vector.extract_strided_slice %10 {offsets = [0, 48], sizes = [16, 16], strides = [1, 1]} : vector<16x64xf32> to vector<16x16xf32>
    %84 = vector.extract_strided_slice %7 {offsets = [0, 112], sizes = [16, 16], strides = [1, 1]} : vector<16x192xf32> to vector<16x16xf32>
    %85 = vector.extract_strided_slice %7 {offsets = [0, 176], sizes = [16, 16], strides = [1, 1]} : vector<16x192xf32> to vector<16x16xf32>
    %86 = arith.truncf %83 : vector<16x16xf32> to vector<16x16xbf16>
    %87 = arith.truncf %84 : vector<16x16xf32> to vector<16x16xbf16>
    %cst_25 = arith.constant dense<0.000000e+00> : vector<16x16xf32>
    %88 = tpu.matmul %86, %87, %cst_25 {dimension_numbers = #tpu.dot_dimension_numbers<[1], [1], [0], [0], [0, 0, 1, 0], [], []>} : vector<16x16xbf16>, vector<16x16xbf16>, vector<16x16xf32> -> vector<16x16xf32>
    %cst_26 = arith.constant dense<0xFF800000> : vector<16xf32>
    %89 = vector.multi_reduction <maximumf>, %88, %cst_26 [1] : vector<16x16xf32> to vector<16xf32>
    %90 = vector.shape_cast %89 : vector<16xf32> to vector<16x1xf32>
    %91 = vector.broadcast %90 : vector<16x1xf32> to vector<16x16xf32>
    %92 = arith.subf %88, %91 : vector<16x16xf32>
    %93 = math.exp %92 : vector<16x16xf32>
    %cst_27 = arith.constant dense<0.000000e+00> : vector<16xf32>
    %94 = vector.multi_reduction <add>, %93, %cst_27 [1] : vector<16x16xf32> to vector<16xf32>
    %95 = vector.shape_cast %94 : vector<16xf32> to vector<16x1xf32>
    %96 = arith.truncf %93 : vector<16x16xf32> to vector<16x16xbf16>
    %97 = arith.truncf %85 : vector<16x16xf32> to vector<16x16xbf16>
    %cst_28 = arith.constant dense<0.000000e+00> : vector<16x16xf32>
    %98 = tpu.matmul %96, %97, %cst_28 {dimension_numbers = #tpu.dot_dimension_numbers<[1], [0], [0], [1], [0, 0, 1, 1], [], []>} : vector<16x16xbf16>, vector<16x16xbf16>, vector<16x16xf32> -> vector<16x16xf32>
    %99 = tpu.reciprocal %95 {approx = true} : vector<16x1xf32> -> vector<16x1xf32>
    %100 = vector.broadcast %99 : vector<16x1xf32> to vector<16x16xf32>
    %101 = arith.mulf %98, %100 : vector<16x16xf32>
    %102 = arith.truncf %101 : vector<16x16xf32> to vector<16x16xbf16>
    %103 = vector.extract_strided_slice %12 {offsets = [48, 0], sizes = [16, 64], strides = [1, 1]} : vector<64x64xbf16> to vector<16x64xbf16>
    %cst_29 = arith.constant dense<0.000000e+00> : vector<16x64xf32>
    %104 = tpu.matmul %102, %103, %cst_29 {dimension_numbers = #tpu.dot_dimension_numbers<[1], [0], [0], [1], [0, 0, 1, 1], [], []>} : vector<16x16xbf16>, vector<16x64xbf16>, vector<16x64xf32> -> vector<16x64xf32>
    %105 = arith.addf %82, %104 : vector<16x64xf32>
    %106 = arith.addf %105, %3 : vector<16x64xf32>
    %c0_30 = arith.constant 0 : index
    %c0_31 = arith.constant 0 : index
    %c0_32 = arith.constant 0 : index
    %107 = vector.load %arg5[%c0_30, %c0_31, %c0_32] : memref<1x1x64xf32, #tpu.memory_space<vmem>>, vector<1x1x64xf32>
    %108 = vector.shape_cast %107 : vector<1x1x64xf32> to vector<1x64xf32>
    %c0_33 = arith.constant 0 : index
    %c0_34 = arith.constant 0 : index
    %c0_35 = arith.constant 0 : index
    %109 = vector.load %arg6[%c0_33, %c0_34, %c0_35] : memref<1x1x64xf32, #tpu.memory_space<vmem>>, vector<1x1x64xf32>
    %110 = vector.shape_cast %109 : vector<1x1x64xf32> to vector<1x64xf32>
    %cst_36 = arith.constant dense<0.000000e+00> : vector<16xf32>
    %111 = vector.multi_reduction <add>, %106, %cst_36 [1] : vector<16x64xf32> to vector<16xf32>
    %112 = vector.shape_cast %111 : vector<16xf32> to vector<16x1xf32>
    %cst_37 = arith.constant 6.400000e+01 : f32
    %113 = vector.broadcast %cst_37 : f32 to vector<16x1xf32>
    %114 = arith.divf %112, %113 : vector<16x1xf32>
    %115 = vector.broadcast %114 : vector<16x1xf32> to vector<16x64xf32>
    %116 = arith.subf %106, %115 : vector<16x64xf32>
    %117 = arith.mulf %116, %116 : vector<16x64xf32>
    %cst_38 = arith.constant dense<0.000000e+00> : vector<16xf32>
    %118 = vector.multi_reduction <add>, %117, %cst_38 [1] : vector<16x64xf32> to vector<16xf32>
    %119 = vector.shape_cast %118 : vector<16xf32> to vector<16x1xf32>
    %cst_39 = arith.constant 6.400000e+01 : f32
    %120 = vector.broadcast %cst_39 : f32 to vector<16x1xf32>
    %121 = arith.divf %119, %120 : vector<16x1xf32>
    %122 = vector.broadcast %114 : vector<16x1xf32> to vector<16x64xf32>
    %123 = arith.subf %106, %122 : vector<16x64xf32>
    %cst_40 = arith.constant 9.99999997E-7 : f32
    %124 = vector.broadcast %cst_40 : f32 to vector<16x1xf32>
    %125 = arith.addf %121, %124 : vector<16x1xf32>
    %126 = math.rsqrt %125 : vector<16x1xf32>
    %127 = vector.broadcast %126 : vector<16x1xf32> to vector<16x64xf32>
    %128 = arith.mulf %123, %127 : vector<16x64xf32>
    %129 = vector.broadcast %108 : vector<1x64xf32> to vector<16x64xf32>
    %130 = arith.mulf %128, %129 : vector<16x64xf32>
    %131 = vector.broadcast %110 : vector<1x64xf32> to vector<16x64xf32>
    %132 = arith.addf %130, %131 : vector<16x64xf32>
    %c0_41 = arith.constant 0 : index
    %c0_42 = arith.constant 0 : index
    %c0_43 = arith.constant 0 : index
    %133 = vector.load %arg7[%c0_41, %c0_42, %c0_43] : memref<1x64x128xbf16, #tpu.memory_space<vmem>>, vector<1x64x128xbf16>
    %134 = vector.shape_cast %133 : vector<1x64x128xbf16> to vector<64x128xbf16>
    %c0_44 = arith.constant 0 : index
    %c0_45 = arith.constant 0 : index
    %c0_46 = arith.constant 0 : index
    %135 = vector.load %arg9[%c0_44, %c0_45, %c0_46] : memref<1x128x64xbf16, #tpu.memory_space<vmem>>, vector<1x128x64xbf16>
    %136 = vector.shape_cast %135 : vector<1x128x64xbf16> to vector<128x64xbf16>
    %c0_47 = arith.constant 0 : index
    %c0_48 = arith.constant 0 : index
    %c0_49 = arith.constant 0 : index
    %137 = vector.load %arg8[%c0_47, %c0_48, %c0_49] : memref<1x1x128xf32, #tpu.memory_space<vmem>>, vector<1x1x128xf32>
    %138 = vector.shape_cast %137 : vector<1x1x128xf32> to vector<1x128xf32>
    %c0_50 = arith.constant 0 : index
    %c0_51 = arith.constant 0 : index
    %c0_52 = arith.constant 0 : index
    %139 = vector.load %arg10[%c0_50, %c0_51, %c0_52] : memref<1x1x64xf32, #tpu.memory_space<vmem>>, vector<1x1x64xf32>
    %140 = vector.shape_cast %139 : vector<1x1x64xf32> to vector<1x64xf32>
    %141 = arith.truncf %132 : vector<16x64xf32> to vector<16x64xbf16>
    %cst_53 = arith.constant 0.000000e+00 : f32
    %142 = vector.broadcast %cst_53 : f32 to vector<16x64xf32>
    %cst_54 = arith.constant dense<0.000000e+00> : vector<16x128xf32>
    %143 = tpu.matmul %141, %134, %cst_54 {dimension_numbers = #tpu.dot_dimension_numbers<[1], [0], [0], [1], [0, 0, 1, 1], [], []>} : vector<16x64xbf16>, vector<64x128xbf16>, vector<16x128xf32> -> vector<16x128xf32>
    %144 = vector.broadcast %138 : vector<1x128xf32> to vector<16x128xf32>
    %145 = arith.addf %143, %144 : vector<16x128xf32>
    %cst_55 = arith.constant 0.000000e+00 : f32
    %146 = vector.broadcast %cst_55 : f32 to vector<16x128xf32>
    %147 = arith.maximumf %145, %146 : vector<16x128xf32>
    %148 = arith.truncf %147 : vector<16x128xf32> to vector<16x128xbf16>
    %cst_56 = arith.constant dense<0.000000e+00> : vector<16x64xf32>
    %149 = tpu.matmul %148, %136, %cst_56 {dimension_numbers = #tpu.dot_dimension_numbers<[1], [0], [0], [1], [0, 0, 1, 1], [], []>} : vector<16x128xbf16>, vector<128x64xbf16>, vector<16x64xf32> -> vector<16x64xf32>
    %150 = arith.addf %142, %149 : vector<16x64xf32>
    %151 = vector.broadcast %140 : vector<1x64xf32> to vector<16x64xf32>
    %152 = arith.addf %150, %151 : vector<16x64xf32>
    %153 = arith.addf %152, %132 : vector<16x64xf32>
    %c0_57 = arith.constant 0 : index
    %c0_58 = arith.constant 0 : index
    %c0_59 = arith.constant 0 : index
    %154 = vector.load %arg11[%c0_57, %c0_58, %c0_59] : memref<1x1x64xf32, #tpu.memory_space<vmem>>, vector<1x1x64xf32>
    %155 = vector.shape_cast %154 : vector<1x1x64xf32> to vector<1x64xf32>
    %c0_60 = arith.constant 0 : index
    %c0_61 = arith.constant 0 : index
    %c0_62 = arith.constant 0 : index
    %156 = vector.load %arg12[%c0_60, %c0_61, %c0_62] : memref<1x1x64xf32, #tpu.memory_space<vmem>>, vector<1x1x64xf32>
    %157 = vector.shape_cast %156 : vector<1x1x64xf32> to vector<1x64xf32>
    %cst_63 = arith.constant dense<0.000000e+00> : vector<16xf32>
    %158 = vector.multi_reduction <add>, %153, %cst_63 [1] : vector<16x64xf32> to vector<16xf32>
    %159 = vector.shape_cast %158 : vector<16xf32> to vector<16x1xf32>
    %cst_64 = arith.constant 6.400000e+01 : f32
    %160 = vector.broadcast %cst_64 : f32 to vector<16x1xf32>
    %161 = arith.divf %159, %160 : vector<16x1xf32>
    %162 = vector.broadcast %161 : vector<16x1xf32> to vector<16x64xf32>
    %163 = arith.subf %153, %162 : vector<16x64xf32>
    %164 = arith.mulf %163, %163 : vector<16x64xf32>
    %cst_65 = arith.constant dense<0.000000e+00> : vector<16xf32>
    %165 = vector.multi_reduction <add>, %164, %cst_65 [1] : vector<16x64xf32> to vector<16xf32>
    %166 = vector.shape_cast %165 : vector<16xf32> to vector<16x1xf32>
    %cst_66 = arith.constant 6.400000e+01 : f32
    %167 = vector.broadcast %cst_66 : f32 to vector<16x1xf32>
    %168 = arith.divf %166, %167 : vector<16x1xf32>
    %169 = vector.broadcast %161 : vector<16x1xf32> to vector<16x64xf32>
    %170 = arith.subf %153, %169 : vector<16x64xf32>
    %cst_67 = arith.constant 9.99999997E-7 : f32
    %171 = vector.broadcast %cst_67 : f32 to vector<16x1xf32>
    %172 = arith.addf %168, %171 : vector<16x1xf32>
    %173 = math.rsqrt %172 : vector<16x1xf32>
    %174 = vector.broadcast %173 : vector<16x1xf32> to vector<16x64xf32>
    %175 = arith.mulf %170, %174 : vector<16x64xf32>
    %176 = vector.broadcast %155 : vector<1x64xf32> to vector<16x64xf32>
    %177 = arith.mulf %175, %176 : vector<16x64xf32>
    %178 = vector.broadcast %157 : vector<1x64xf32> to vector<16x64xf32>
    %179 = arith.addf %177, %178 : vector<16x64xf32>
    %c0_68 = arith.constant 0 : index
    %c0_69 = arith.constant 0 : index
    %180 = vector.load %arg14[%c0_68, %c0_69] : memref<16x64xf32, #tpu.memory_space<vmem>>, vector<16x64xf32>
    tpu.vector_store %arg14[%c0_68, %c0_69], %179 {strides = array<i32>} : memref<16x64xf32, #tpu.memory_space<vmem>>, vector<16x64xf32>,
    %c1_i32 = arith.constant 1 : i32
    %181 = arith.cmpi eq, %arg1, %c1_i32 : i32
    %182 = arith.extui %181 : i1 to i32
    %c0_i32_70 = arith.constant 0 : i32
    %183 = arith.cmpi ne, %182, %c0_i32_70 : i32
    scf.if %183 {
      %c0_71 = arith.constant 0 : index
      %c0_72 = arith.constant 0 : index
      %c0_73 = arith.constant 0 : index
      %184 = vector.load %arg13[%c0_71, %c0_72, %c0_73] : memref<1x16x64xf32, #tpu.memory_space<vmem>>, vector<1x16x64xf32>
      %185 = vector.shape_cast %184 : vector<1x16x64xf32> to vector<16x64xf32>
      %186 = vector.shape_cast %179 : vector<16x64xf32> to vector<1x16x64xf32>
      tpu.vector_store %arg13[%c0_71, %c0_72, %c0_73], %186 {strides = array<i32>} : memref<1x16x64xf32, #tpu.memory_space<vmem>>, vector<1x16x64xf32>,
    } else {
    }
    return
  }
  func.func @transform_0(%arg0: i32, %arg1: i32) -> (i32, i32, i32) {
    %c0_i32 = arith.constant 0 : i32
    %c0_i32_0 = arith.constant 0 : i32
    %c0_i32_1 = arith.constant 0 : i32
    return %arg0, %c0_i32, %c0_i32_0 : i32, i32, i32
  }
  func.func @transform_1(%arg0: i32, %arg1: i32) -> (i32, i32, i32) {
    %c0_i32 = arith.constant 0 : i32
    %c0_i32_0 = arith.constant 0 : i32
    %c0_i32_1 = arith.constant 0 : i32
    return %arg1, %c0_i32, %c0_i32_0 : i32, i32, i32
  }
  func.func @transform_2(%arg0: i32, %arg1: i32) -> (i32, i32, i32) {
    %c0_i32 = arith.constant 0 : i32
    %c0_i32_0 = arith.constant 0 : i32
    %c0_i32_1 = arith.constant 0 : i32
    return %arg1, %c0_i32, %c0_i32_0 : i32, i32, i32
  }
  func.func @transform_3(%arg0: i32, %arg1: i32) -> (i32, i32, i32) {
    %c0_i32 = arith.constant 0 : i32
    %c0_i32_0 = arith.constant 0 : i32
    %c0_i32_1 = arith.constant 0 : i32
    return %arg1, %c0_i32, %c0_i32_0 : i32, i32, i32
  }
  func.func @transform_4(%arg0: i32, %arg1: i32) -> (i32, i32, i32) {
    %c0_i32 = arith.constant 0 : i32
    %c0_i32_0 = arith.constant 0 : i32
    %c0_i32_1 = arith.constant 0 : i32
    return %arg1, %c0_i32, %c0_i32_0 : i32, i32, i32
  }
  func.func @transform_5(%arg0: i32, %arg1: i32) -> (i32, i32, i32) {
    %c0_i32 = arith.constant 0 : i32
    %c0_i32_0 = arith.constant 0 : i32
    %c0_i32_1 = arith.constant 0 : i32
    return %arg1, %c0_i32, %c0_i32_0 : i32, i32, i32
  }
  func.func @transform_6(%arg0: i32, %arg1: i32) -> (i32, i32, i32) {
    %c0_i32 = arith.constant 0 : i32
    %c0_i32_0 = arith.constant 0 : i32
    %c0_i32_1 = arith.constant 0 : i32
    return %arg1, %c0_i32, %c0_i32_0 : i32, i32, i32
  }
  func.func @transform_7(%arg0: i32, %arg1: i32) -> (i32, i32, i32) {
    %c0_i32 = arith.constant 0 : i32
    %c0_i32_0 = arith.constant 0 : i32
    %c0_i32_1 = arith.constant 0 : i32
    return %arg1, %c0_i32, %c0_i32_0 : i32, i32, i32
  }
  func.func @transform_8(%arg0: i32, %arg1: i32) -> (i32, i32, i32) {
    %c0_i32 = arith.constant 0 : i32
    %c0_i32_0 = arith.constant 0 : i32
    %c0_i32_1 = arith.constant 0 : i32
    return %arg1, %c0_i32, %c0_i32_0 : i32, i32, i32
  }
  func.func @transform_9(%arg0: i32, %arg1: i32) -> (i32, i32, i32) {
    %c0_i32 = arith.constant 0 : i32
    %c0_i32_0 = arith.constant 0 : i32
    %c0_i32_1 = arith.constant 0 : i32
    return %arg1, %c0_i32, %c0_i32_0 : i32, i32, i32
  }
  func.func @transform_10(%arg0: i32, %arg1: i32) -> (i32, i32, i32) {
    %c0_i32 = arith.constant 0 : i32
    %c0_i32_0 = arith.constant 0 : i32
    %c0_i32_1 = arith.constant 0 : i32
    return %arg1, %c0_i32, %c0_i32_0 : i32, i32, i32
  }
  func.func @transform_11(%arg0: i32, %arg1: i32) -> (i32, i32, i32) {
    %c0_i32 = arith.constant 0 : i32
    %c0_i32_0 = arith.constant 0 : i32
    %c0_i32_1 = arith.constant 0 : i32
    return %arg0, %c0_i32, %c0_i32_0 : i32, i32, i32
  }
}

</mosaic_0001>

<bundles_post_ra>
// kernel: tpu_custom_call.1
= control target key start
LH: loop header
LB: loop body
LE: loop exit
PB: predicated region body
PF: predicated region fallthrough
CT: control target
= control target key end

     0   :  { %s3152_s0 = inlined_call_operand.hbm [shape: f32[2,16,64], index: 0, kind: input, shape index: {}]   ;;  %s3153_s1 = inlined_call_operand.vmem [shape: bf16[2,64,192], index: 1, kind: input, shape index: {}]   ;;  %s3154_s2 = inlined_call_operand.vmem [shape: bf16[2,64,64], index: 2, kind: input, shape index: {}]   ;;  %s3155_s3 = inlined_call_operand.vmem [shape: f32[2,1,64], index: 3, kind: input, shape index: {}]   ;;  %s3156_s4 = inlined_call_operand.vmem [shape: f32[2,1,64], index: 4, kind: input, shape index: {}]   ;;  %s3157_s5 = inlined_call_operand.hbm [shape: bf16[2,64,128], index: 5, kind: input, shape index: {}]   ;;  %s3158_s6 = inlined_call_operand.vmem [shape: f32[2,1,128], index: 6, kind: input, shape index: {}]   ;;  %s3159_s7 = inlined_call_operand.vmem [shape: bf16[2,128,64], index: 7, kind: input, shape index: {}]   ;;  %s3160_s8 = inlined_call_operand.vmem [shape: f32[2,1,64], index: 8, kind: input, shape index: {}]   ;;  %s3161_s9 = inlined_call_operand.vmem [shape: f32[2,1,64], index: 9, kind: input, shape index: {}]   ;;  %s3162_s10 = inlined_call_operand.vmem [shape: f32[2,1,64], index: 10, kind: input, shape index: {}]   ;;  %s3163_s11 = inlined_call_operand.hbm [shape: f32[2,16,64], index: 11, kind: output, shape index: {}]  }
   0x1   :  { %3186 = sst [smem:[#allocation28_spill]] %s3152_s0 }
   0x2   :  { %3187 = sst [smem:[#allocation29_spill]] %s3153_s1 }
   0x3   :  { %3188 = sst [smem:[#allocation30_spill]] %s3154_s2 }
   0x4   :  { %3189 = sst [smem:[#allocation31_spill]] %s3157_s5 }
   0x5   :  { %3190 = sst [smem:[#allocation32_spill]] %s3158_s6 }
   0x6   :  { %3191 = sst [smem:[#allocation33_spill]] %s3159_s7 }
   0x7   :  { %3192 = sst [smem:[#allocation34_spill]] %s3160_s8 }
   0x8   :  { %3193 = sst [smem:[#allocation35_spill]] %s3161_s9 }
   0x9   :  { %3194 = sst [smem:[#allocation36_spill]] %s3162_s10 }
   0xa   :  { %3195 = sst [smem:[#allocation37_spill]] %s3163_s11 }
   0xb   :  { %16 = vsyncpa [#allocation4], 0 }
   0xc   :  { %18 = vsyncpa [#allocation4 + $0x1], 0 }
   0xd   :  { %19 = vsyncpa [#allocation7], 0 }
   0xe   :  { %21 = vsyncpa [#allocation7 + $0x1], 0 }
   0xf   :  { %22 = vsyncpa [#allocation5], 0 }
  0x10   :  { %24 = vsyncpa [#allocation5 + $0x1], 0  ;;  %s2601_s17 = smov 0   ;;  %s2603_s18 = smov 0  }
  0x11   :  { %s2605_s19 = smov 0   ;;  %s2607_s20 = smov 0  }
  0x12   :  { %s2609_s21 = smov 0   ;;  %s2611_s22 = smov 0  }
  0x13   :  { %s2613_s23 = smov 0   ;;  %s2615_s24 = smov 0  }
  0x14   :  { %s2617_s25 = smov 0   ;;  %s2619_s26 = smov 0  }
  0x15   :  { %s2621_s27 = smov 0  }
  0x16 LB: > { %3196 = sst [smem:[#allocation12_spill]] %s2484_s18  ;;  %s1924_s28 = sadd.s32 4294967295, %s2520_s27   ;;  %s2520_s27 = sphi %s2621_s27, %s30_s27   ;;  %s2516_s26 = sphi %s2619_s26, %s3262_s26   ;;  %s2512_s25 = sphi %s2617_s25, %s3261_s25   ;;  %s2508_s24 = sphi %s2615_s24, %s3260_s24   ;;  %s2504_s23 = sphi %s2613_s23, %s3259_s23   ;;  %s2500_s22 = sphi %s2611_s22, %s3258_s22   ;;  %s2496_s21 = sphi %s2609_s21, %s3257_s21   ;;  %s2492_s20 = sphi %s2607_s20, %s3256_s20   ;;  %s2488_s19 = sphi %s2605_s19, %s3255_s19   ;;  %s2484_s18 = sphi %s2603_s18, %s3254_s18   ;;  %s2480_s17 = sphi %s2601_s17, %s3253_s17  }
  0x17   : > { %3197 = sst [smem:[#allocation13_spill]] %s2488_s19  ;;  %s1925_s29 = sadd.s32 4294967294, %s2520_s27  }
  0x18   : > { %3198 = sst [smem:[#allocation14_spill]] %s2492_s20  ;;  %p56_p0 = scmp.ne.s32.totalorder %s2500_s22, %s2496_s21 }
  0x19   : > { %3199 = sst [smem:[#allocation15_spill]] %s2496_s21  ;;  %p3170_p1 = scmp.eq.s32.totalorder %s2520_s27, 0 }
  0x1a   : > { %3200 = sst [smem:[#allocation16_spill]] %s2500_s22  ;;  %p62_p2 = scmp.ne.s32.totalorder %s2496_s21, %s2492_s20 }
  0x1b   : > { %3201 = sst [smem:[#allocation17_spill]] %s2508_s24  ;;  %p2665_p3 = scmp.eq.s32.totalorder %s1924_s28, 0 }
  0x1c   : > { %3202 = sst [smem:[#allocation18_spill]] %s2512_s25  ;;  %p2671_p4 = por %p3170_p1, %p56_p0 }
  0x1d   : > { %3203 = sst [smem:[#allocation19_spill]] %s2516_s26  ;;  %p346_p5 = scmp.eq.s32.totalorder %s1924_s28, 3 }
  0x1e   : > { %3204 = sst [smem:[#allocation20_spill]] %s2520_s27  ;;  %p2677_p6 = por %p2665_p3, %p62_p2 }
  0x1f   : > { %p352_p7 = scmp.eq.s32.totalorder %s1925_s29, 3  ;;  %p2681_p8 = por %p346_p5, %p56_p0 }
  0x20   : > { %s3207_s15 = scalar_select %p2677_p6, 1, 0 }
  0x21   : > { %s3208_s16 = scalar_select %p2681_p8, 1, 0 }
  0x22   : > { %p2685_p9 = por %p352_p7, %p62_p2  ;;  %p3169_p10 = scmp.lt.s32.totalorder %s2520_s27, 4 }
  0x23   : > { %3209 = sst [smem:[#allocation21_spill]] %s3208_s16  ;;  %s372_s30 = sand.u32 1, %s2500_s22  }
  0x24   : > { %s3210_s12 = scalar_select %p2685_p9, 1, 0 }
  0x25   : > { %s1995_s20 = sshll.u32 %s2516_s26, 8  ;;  %s1928_s11 = sshll.u32 %s372_s30, 4 }
  0x26   : > { %3211 = sst [smem:[#allocation22_spill]] %s3210_s12  ;;  %s376_s29 = scalar_lea.vmem [#allocation3], %s1928_s11 }
  0x27   : > { %s3212_s0 = sld [smem:[#allocation28_spill]]  ;;  %s383_s9 = sshll.u32 %s376_s29, 4  ;;  %s2705_s9 = int_to_ptr.vmem [resolvable:$true] %s383_s9 }
  0x28   : > { %p2701_p11 = pnand %p3169_p10, %p2671_p4  ;;  %s2707_s12 = scalar_lea.sflag [#allocation4], %s372_s30 }
  0x2a   : > { %p2336_p13 = pneg %p2701_p11 }
  0x2d   : > { %s2695_s10 = scalar_lea.hbm %s3212_s0, %s1995_s20  ;;  %s2339_s14 = scalar_lea.hbm %s3212_s0, 512 }
  0x2e   : > { %s2334_s20 = scalar_lea.hbm %s2695_s10, 256  ;;  %p2340_p4 = scmp.lt.u32.totalorder %s2695_s10, %s3212_s0 }
  0x2f   : > { %p2335_p12 = scmp.ne.s32.totalorder %s2695_s10, %s2334_s20  ;;  %p2341_p5 = scmp.lt.u32.totalorder %s2339_s14, %s2334_s20 }
  0x30   : > { %p2343_p10 = scmp.lt.u32.totalorder %s2334_s20, %s2695_s10 }
  0x31   : > { %p2337_p0 = pnand %p2336_p13, %p2335_p12  ;;  %p2342_p7 = por %p2341_p5, %p2340_p4 }
  0x33   : > { %p2338_p2 = pneg %p2337_p0  ;;  %p2344_p1 = por %p2343_p10, %p2342_p7 }
  0x35   : > { %p2345_p9 = pnand %p2344_p1, %p2338_p2 }
  0x37   : > { %2348 = shalt.err (!%p2345_p9)
}
  0x38   : > { %s2349_s30 = scalar_lea.vmem %s2705_s9, 256  ;;  %s2522_s11 = smov [#allocation3]  }
  0x39   : > { %p2350_p12 = scmp.ne.s32.totalorder %s2705_s9, %s2349_s30  ;;  %s2354_s24 = sshll.u32 %s2522_s11, 4  ;;  %s2355_s24 = int_to_ptr.vmem [resolvable:$false] %s2354_s24 }
  0x3a   : > { %s2356_s28 = scalar_lea.vmem %s2355_s24, 512  ;;  %p2357_p6 = scmp.lt.s32.totalorder %s2705_s9, %s2355_s24 }
  0x3b   : > { %p2352_p0 = pnand %p2350_p12, %p2336_p13  ;;  %p2358_p4 = scmp.lt.s32.totalorder %s2356_s28, %s2349_s30 }
  0x3d   : > { %p2353_p8 = pneg %p2352_p0  ;;  %p2359_p5 = por %p2358_p4, %p2357_p6 }
  0x3f   : > { %p2360_p10 = pnand %p2359_p5, %p2353_p8 }
  0x41   : > { %2363 = shalt.err (!%p2360_p10)
}
  0x42   : > { %s2523_s20 = smov 128   ;;  %s2524_s14 = smov 8  }
  0x43   : > { %2152 = dma.hbm_to_vmem [thread:$0]  (!%p2701_p11), %s2695_s10, 256, %s2705_s9, %s2707_s12, %s2523_s20, %s2523_s20, %s2524_s14  }
  0x44   : > { %p1934_p1 = scmp.ge.s32.totalorder %s2520_s27, 1  ;;  %p472_p6 = scmp.lt.s32.totalorder %s2520_s27, 5 }
  0x45   : > { %s39_s30 = sadd.s32 1, %s2512_s25  ;;  %s179_s11 = sadd.s32 1, %s2488_s19 }
  0x46   : > { %p2737_p8 = pnand %p1934_p1, %p472_p6  ;;  %p40_p9 = scmp.ge.s32.totalorder %s39_s30, 2 }
  0x47   : > { %p186_p13 = scmp.ne.s32.totalorder %s2488_s19, %s2484_s18  ;;  %p192_p2 = scmp.ne.s32.totalorder %s2484_s18, %s2480_s17 }
  0x48   : > { %s3264_s30 = smov (%p40_p9, %s39_s30), 0  ;;  %s3216_s9 = sadd.s32 1, %s2516_s26 }
  0x49   : > { %3215 = sst [smem:[#allocation23_spill]] %s3264_s30  ;;  %s3266_s9 = smov (!%p40_p9, %s3216_s9), %s2516_s26 }
  0x4a   : > { %s176_s10 = ssub.s32 %s2512_s25, %s3264_s30  ;;  %p3217_p11 = scmp.eq.s32.totalorder %s2520_s27, 0 }
  0x4b   : > { %p44_p12 = scmp.ge.s32.totalorder %s3266_s9, 2  ;;  %p177_p0 = scmp.eq.s32.totalorder %s176_s10, 0 }
  0x4c   : > { %p2756_p7 = por %p186_p13, %p3217_p11  ;;  %p2762_p4 = por %p192_p2, %p2665_p3 }
  0x4d   : > { %s421_s17 = sand.u32 1, %s2488_s19   ;;  %s3268_s9 = smov (%p44_p12, %s3266_s9), 0 }
  0x4e   : > { %s3219_s16 = scalar_select %p2762_p4, 1, 0 }
  0x4f   : > { %3220 = sst [smem:[#allocation24_spill]] %s3268_s9  ;;  %s46_s28 = ssub.s32 %s2516_s26, %s3268_s9 }
  0x50   : > { %s2770_s24 = scalar_select %p177_p0, %s2488_s19, %s179_s11  }
  0x51   : > { %p47_p5 = scmp.eq.s32.totalorder %s46_s28, 0  ;;  %s1931_s20 = sshll.u32 %s421_s17, 5 }
  0x52   : > { %3221 = sst [smem:[#allocation25_spill]] %s2770_s24  ;;  %s1996_s14 = sshll.u32 %s2512_s25, 9 }
  0x53   : > { %s3222_s0 = sadd.s32 1, %s2500_s22  ;;  %s3224_s5 = sld [smem:[#allocation31_spill]] }
  0x54   : > { %s2778_s30 = scalar_select %p47_p5, %s2500_s22, %s3222_s0  }
  0x55   : > { %s425_s7 = scalar_lea.vmem [#allocation6], %s1931_s20  ;;  %p3225_p3 = scmp.lt.s32.totalorder %s2520_s27, 4 }
  0x56   : > { %3223 = sst [smem:[#allocation26_spill]] %s2778_s30  ;;  %s432_s6 = sshll.u32 %s425_s7, 4  ;;  %s2785_s6 = int_to_ptr.vmem [resolvable:$true] %s432_s6 }
  0x57   : > { %p2791_p10 = pnand %p3225_p3, %p2756_p7  ;;  %s2795_s0 = scalar_lea.sflag [#allocation7], %s421_s17 }
  0x59   : > { %s2783_s13 = scalar_lea.hbm %s3224_s5, %s1996_s14  ;;  %p2366_p6 = pneg %p2791_p10 }
  0x5a   : > { %s2364_s8 = scalar_lea.hbm %s2783_s13, 512  ;;  %s2369_s12 = scalar_lea.hbm %s3224_s5, 1024 }
  0x5b   : > { %p2365_p1 = scmp.ne.s32.totalorder %s2783_s13, %s2364_s8  ;;  %p2370_p2 = scmp.lt.u32.totalorder %s2783_s13, %s3224_s5 }
  0x5c   : > { %p2371_p11 = scmp.lt.u32.totalorder %s2369_s12, %s2364_s8  ;;  %p2373_p12 = scmp.lt.u32.totalorder %s2364_s8, %s2783_s13 }
  0x5d   : > { %p2367_p9 = pnand %p2366_p6, %p2365_p1 }
  0x5e   : > { %p2372_p7 = por %p2371_p11, %p2370_p2 }
  0x5f   : > { %p2368_p13 = pneg %p2367_p9 }
  0x60   : > { %p2374_p0 = por %p2373_p12, %p2372_p7 }
  0x62   : > { %p2375_p5 = pnand %p2374_p0, %p2368_p13 }
  0x64   : > { %2378 = shalt.err (!%p2375_p5)
}
  0x65   : > { %s2379_s17 = scalar_lea.vmem %s2785_s6, 512  ;;  %s2525_s10 = smov [#allocation6]  }
  0x66   : > { %p2380_p3 = scmp.ne.s32.totalorder %s2785_s6, %s2379_s17  ;;  %s2384_s7 = sshll.u32 %s2525_s10, 4  ;;  %s2385_s7 = int_to_ptr.vmem [resolvable:$false] %s2384_s7 }
  0x67   : > { %s2386_s28 = scalar_lea.vmem %s2385_s7, 1024  ;;  %p2387_p4 = scmp.lt.s32.totalorder %s2785_s6, %s2385_s7 }
  0x68   : > { %p2382_p1 = pnand %p2380_p3, %p2366_p6  ;;  %p2388_p2 = scmp.lt.s32.totalorder %s2386_s28, %s2379_s17 }
  0x6a   : > { %p2383_p9 = pneg %p2382_p1  ;;  %p2389_p11 = por %p2388_p2, %p2387_p4 }
  0x6c   : > { %p2390_p7 = pnand %p2389_p11, %p2383_p9 }
  0x6e   : > { %2393 = shalt.err (!%p2390_p7)
}
  0x6f   : > { %s2526_s8 = smov 64   ;;  %s2527_s12 = smov 4  }
  0x70   : > { %2155 = dma.hbm_to_vmem [thread:$0]  (!%p2791_p10), %s2783_s13, 512, %s2785_s6, %s2795_s0, %s2526_s8, %s2526_s8, %s2527_s12  }
  0x71   : > { %476 = sbr.rel (%p2737_p8) target bundleno = 3404 (0xd4c), region = 64 }
  0x78   : > { %s2826_s20 = sand.u32 1, %s2496_s21   ;;  %p3228_p4 = scmp.ne.s32.totalorder %s3207_s15, 0 }
  0x79   : > { %3227 = sst [smem:[#allocation27_spill]] %s2826_s20  ;;  %s1935_s14 = sshll.u32 %s2826_s20, 4 }
  0x7a   : > { %s479_s17 = scalar_lea.sflag [#allocation4], %s2826_s20  ;;  %s482_s10 = scalar_lea.vmem [#allocation3], %s1935_s14 }
  0x7b   : > { %2467 = dma.done.wait (%p3228_p4), %s479_s17, 256  }
  0x7c   : > { %2469 = vsyncadd (%p3228_p4), %s479_s17, 4294967040  ;;  %s487_s6 = sand.u32 1, %s2484_s18   ;;  %p3229_p8 = scmp.ne.s32.totalorder %s3219_s16, 0 }
  0x7d   : > { %s1936_s13 = sshll.u32 %s487_s6, 5  ;;  %s488_s29 = scalar_lea.sflag [#allocation7], %s487_s6 }
  0x7e   : > { %s2835_s11 = scalar_lea.vmem [#allocation6], %s1936_s13 }
  0x7f   : > { %2471 = dma.done.wait (%p3229_p8), %s488_s29, 512  }
  0x80   : > { %2473 = vsyncadd (%p3229_p8), %s488_s29, 4294966784  ;;  %p568_p10 = scmp.lt.s32.totalorder %s2504_s23, 1  ;;  %s3230_s1 = sld [smem:[#allocation29_spill]] }
  0x81   : > { %s3231_s2 = sld [smem:[#allocation30_spill]]  ;;  %s3232_s21 = sld [smem:[#allocation32_spill]] }
  0x82   : > { %s2843_s0 = scalar_select %p568_p10, %s2504_s23, 1 }
  0x83   : > { %s3234_s17 = sld [smem:[#allocation34_spill]]  ;;  %s3235_s29 = sld [smem:[#allocation35_spill]] }
  0x84   : > { %s1997_s15 = sshll.u32 %s2843_s0, 6  ;;  %s1998_s7 = sshll.u32 %s2843_s0, 5 }
  0x85   : > { %s3236_s9 = sld [smem:[#allocation36_spill]]  ;;  %s2886_s20 = scalar_lea.vmem [#allocation8], %s1935_s14 }
  0x86   : > { %s2850_s16 = scalar_lea.vmem %s3230_s1, %s1997_s15  ;;  %s3233_s1 = sld [smem:[#allocation33_spill]] }
  0x87   : > { %s2855_s6 = scalar_lea.vmem %s3231_s2, %s1998_s7  ;;  %s586_s24 = scalar_lea.vmem %s3232_s21, %s2843_s0 }
  0x88   : > { %p1944_p6 = scmp.ne.s32.totalorder %s2504_s23, 0 }
  0x89   : > { %s594_s2 = scalar_lea.vmem %s3234_s17, %s2843_s0  ;;  %s597_s5 = scalar_lea.vmem %s3235_s29, %s2843_s0  ;;  %v606_v0 = vld [vmem:[%s482_s10] sm:$0xff] (!%p1944_p6)  ;;  %vm608_vm0 = vcmask (!%p1944_p6), 523264   ;;  %v607_v1 = vld [vmem:[%s482_s10 + $0x8] sm:$0xff] (!%p1944_p6) }
  0x8a   : > { %605 = sbr.rel (%p1944_p6) target bundleno = 145 (0x91), region = 76  ;;  %609 = vst.msk [vmem:[#allocation2] sm:$0xff] (!%p1944_p6), %vm608_vm0, %v606_v0  ;;  %610 = vst.msk [vmem:[#allocation2 + $0x8] sm:$0xff] (!%p1944_p6), %vm608_vm0, %v607_v1 }
  0x8b   : > { %s600_s25 = scalar_lea.vmem %s3236_s9, %s2843_s0 }
  0x8c   : > { %s2872_s19 = scalar_lea.vmem %s3233_s1, %s1997_s15 }
  0x91 PF: > { %v2266_v2 = vld [vmem:[%s2850_s16 + $0x4] ss:$8 sps:$4 sm:$0xff]   ;;  %v2268_v3 = vld [vmem:[%s2850_s16] ss:$8 sps:$4 sm:$0xff]   ;;  %v2528_v4 = vmov 0   ;;  %vm662_vm1 = vcmask 523264   ;;  %s3237_s15 = scalar_lea.vmem %s3155_s3, %s2843_s0  ;;  %s3238_s28 = scalar_lea.vmem %s3156_s4, %s2843_s0 }
  0x92   : > { %698 = vmatprep.mubr.bf16.mxu0 %v2528_v4  ;;  %666 = vmatprep.subr.bf16.mxu0 %v2266_v2  ;;  %v2269_v5 = vld [vmem:[%s2850_s16 + $0x14] ss:$8 sps:$4 sm:$0xff]   ;;  %v2271_v6 = vld [vmem:[%s2850_s16 + $0x10] ss:$8 sps:$4 sm:$0xff]   ;;  %v2272_v7 = vld [vmem:[%s2850_s16 + $0x24] ss:$8 sps:$4 sm:$0xff]  }
  0x93   : > { %667 = vmatpush1.bf16.msra.mxu0 %v2268_v3  ;;  %v2274_v8 = vld [vmem:[%s2850_s16 + $0x20] ss:$8 sps:$4 sm:$0xff]   ;;  %v2275_v9 = vld [vmem:[%s2850_s16 + $0x34] ss:$8 sps:$4 sm:$0xff]   ;;  %v2277_v10 = vld [vmem:[%s2850_s16 + $0x30] ss:$8 sps:$4 sm:$0xff]  }
  0x94   : > { %668 = vmatprep.subr.bf16.mxu0 %v2269_v5  ;;  %v2897_v11 = vld [vmem:[#allocation2] sm:$0xff]  ;;  %v2899_v12 = vld [vmem:[#allocation2 + $0x8] sm:$0xff]  ;;  %v2529_v14 = vmov 0.0   ;;  %vm2530_vm2 = vmmov 0   ;;  %s2531_s1 = smov 64   ;;  %s2532_s18 = smov 112  }
  0x95   : > { %v613_v13 = vpack.c.bf16 %v2899_v12, %v2897_v11  ;;  %2045 = vmatprep.subr.bf16.mxu1 %v2529_v14  ;;  %2047 = vmatprep.mubr.msk.bf16.mxu1 %vm2530_vm2, %v2529_v14  ;;  %s2533_s21 = smov 48   ;;  %vm724_vm3 = vcmask 130048   ;;  %s2534_s22 = smov 96   ;;  %v2278_v0 = vld [vmem:[%s2855_s6] sm:$0xff]   ;;  %v2279_v1 = vld [vmem:[%s2855_s6 + $0x8] sm:$0xff]  }
  0x96   : > { %s2535_s27 = smov 32   ;;  %s2536_s30 = smov 80  }
  0x97   : > { %669 = vmatpush1.bf16.msra.mxu0 %v2271_v6  ;;  %s2537_s14 = smov 16   ;;  %p1989_p13 = scmp.ne.s32.totalorder %s2504_s23, 1 }
  0x98   : > { %670 = vmatprep.subr.bf16.mxu0 %v2272_v7 }
  0x9b   : > { %671 = vmatpush1.bf16.msra.mxu0 %v2274_v8 }
  0x9c   : > { %672 = vmatprep.subr.bf16.mxu0 %v2275_v9 }
  0x9f   : > { %673 = vmatpush1.bf16.msra.mxu0 %v2277_v10 }
  0xa0   : > { %2039 = vmatprep.subr.bf16.mxu0 %v2529_v14 }
  0xa2   : > { %1953 = vmatmul.mubr.msk.bf16.vlgmr.msra.gmra.mrb[0].mxu0 %vm662_vm1, %v613_v13 }
  0xa3   : > { %2041 = vmatprep.mubr.msk.bf16.mxu0 %vm2530_vm2, %v2529_v14 }
 0x175   : > { %v700_v15 = vpop.f32.mrb[0].mxu0 }
 0x176   : > { %v702_v16 = vpop.f32.mrb[1].mxu0  ;;  %v709_v18 = vmul.f32 0.25, %v700_v15 }
 0x177   : > { %v704_v17 = vpop.f32.mrb[2].mxu0 }
 0x178   : > { %v710_v19 = vmul.f32 0.25, %v704_v17  ;;  %v2910_v20 = vpack.c.bf16 %v704_v17, %v700_v15  ;;  %v706_v21 = vpop.f32.mrb[3].mxu0 }
 0x179   : > { %v2912_v22 = vpack.c.bf16 %v706_v21, %v702_v16 }
 0x17a   : > { %v2914_v23 = vpack.c.bf16 %v710_v19, %v709_v18  ;;  %722 = vrot.lane.b32.xlu0 %v2910_v20, %s2531_s1 }
 0x17b   : > { %2046 = vmatpush3.bf16.msra.mxu1 %v2912_v22 }
 0x17c   : > { %842 = vrot.lane.b32.xlu1 %v2914_v23, %s2532_s18  ;;  %2057 = vmatprep.subr.bf16.mxu1 %v2529_v14 }
 0x17e   : > { %844 = vrot.lane.b32.xlu0 %v2910_v20, %s2533_s21 }
 0x1ec   : > { %v723_v24 = vpop.permute.xlu0 %722 }
 0x1ed   : > { %v729_v25 = vsel %vm724_vm3, %v723_v24, 0 }
 0x1ee   : > { %2040 = vmatpush3.bf16.xpose.msra.mxu0 %v729_v25  ;;  %v843_v28 = vpop.permute.xlu1 %842 }
 0x1ef   : > { %2051 = vmatprep.subr.bf16.mxu0 %v2529_v14 }
 0x1f0   : > { %v845_v26 = vpop.permute.xlu0 %844 }
 0x1f1   : > { %v850_v27 = vsel %vm724_vm3, %v845_v26, 0 }
 0x1f5   : > { %2042 = vmatmul.mubr.msk.bf16.vlgmr.msra.gmra.mrb[4].mxu0 %vm724_vm3, %v2914_v23 }
 0x1f6   : > { %2052 = vmatpush3.bf16.xpose.msra.mxu0 %v850_v27  ;;  %2053 = vmatprep.mubr.msk.bf16.mxu0 %vm2530_vm2, %v2529_v14 }
 0x1f7   : > { %2063 = vmatprep.subr.bf16.mxu0 %v2529_v14 }
 0x1fd   : > { %2054 = vmatmul.mubr.msk.bf16.vlgmr.msra.gmra.mrb[8].mxu0 %vm724_vm3, %v843_v28 }
 0x1fe   : > { %2065 = vmatprep.mubr.msk.bf16.mxu0 %vm2530_vm2, %v2529_v14  ;;  %2064 = vmatpush3.bf16.msra.mxu0 %v2279_v1 }
 0x1ff   : > { %2075 = vmatprep.subr.bf16.mxu0 %v2529_v14 }
 0x2c8   : > { %v765_v29 = vpop.f32.mrb[4].mxu0 }
 0x2c9   : > { %v2043_v30 = vpop.f32.mrb[5].mxu0  ;;  %v772_v31 = vsel %vm724_vm3, %v765_v29, -inf }
 0x2ca   : > { %773 = vmax.xlane.f32.xlu1 %v772_v31  ;;  %v768_v32 = vpop.f32.mrb[6].mxu0 }
 0x2cb   : > { %v2044_v33 = vpop.f32.mrb[7].mxu0  ;;  %v775_v34 = vsel %vm724_vm3, %v768_v32, -inf }
 0x2cc   : > { %776 = vmax.xlane.f32.xlu0 %v775_v34 }
 0x2d0   : > { %v886_v35 = vpop.f32.mrb[8].mxu0 }
 0x2d1   : > { %v2055_v36 = vpop.f32.mrb[9].mxu0  ;;  %v893_v37 = vsel %vm724_vm3, %v886_v35, -inf }
 0x2d2   : > { %894 = vmax.xlane.f32.xlu0 %v893_v37  ;;  %v889_v38 = vpop.f32.mrb[10].mxu0 }
 0x2d3   : > { %v2056_v39 = vpop.f32.mrb[11].mxu0  ;;  %v896_v40 = vsel %vm724_vm3, %v889_v38, -inf }
 0x2d4   : > { %897 = vmax.xlane.f32.xlu1 %v896_v40 }
 0x2e8   : > { %913 = vrot.lane.b32.xlu0 %v2912_v22, %s2532_s18 }
 0x2ec   : > { %1065 = vrot.lane.b32.xlu0 %v2914_v23, %s2534_s22 }
 0x357   : > { %v774_v41 = vpop.xlane.xlu1 %773 }
 0x358   : > { %v778_v42 = vsub.f32 %v765_v29, %v774_v41 }
 0x359   : > { %v777_v43 = vpop.xlane.xlu0 %776 }
 0x35a   : > { %v780_v44 = vmul.f32 1.442695, %v778_v42  ;;  %v779_v45 = vsub.f32 %v768_v32, %v777_v43 }
 0x35c   : > { %2294 = vpow2.f32 %v780_v44  ;;  %v782_v46 = vmul.f32 1.442695, %v779_v45 }
 0x35e   : > { %2296 = vpow2.f32 %v782_v46 }
 0x35f   : > { %v895_v47 = vpop.xlane.xlu0 %894 }
 0x360   : > { %v899_v48 = vsub.f32 %v886_v35, %v895_v47 }
 0x361   : > { %v898_v49 = vpop.xlane.xlu1 %897 }
 0x362   : > { %v901_v50 = vmul.f32 1.442695, %v899_v48  ;;  %v900_v51 = vsub.f32 %v889_v38, %v898_v49 }
 0x363   : > { %v914_v57 = vpop.permute.xlu0 %913 }
 0x364   : > { %2298 = vpow2.f32 %v901_v50  ;;  %v903_v52 = vmul.f32 1.442695, %v900_v51 }
 0x366   : > { %v2295_v53 = vpop.eup %2294  ;;  %2300 = vpow2.f32 %v903_v52 }
 0x367   : > { %v784_v54 = vsel %vm724_vm3, %v2295_v53, 0.0  ;;  %v1066_v4 = vpop.permute.xlu0 %1065 }
 0x368   : > { %v2297_v55 = vpop.eup %2296  ;;  %785 = vadd.xlane.f32.xlu0 %v784_v54 }
 0x369   : > { %v790_v56 = vpack.c.bf16 %v2297_v55, %v2295_v53  ;;  %v787_v63 = vsel %vm724_vm3, %v2297_v55, 0.0 }
 0x36b   : > { %2048 = vmatmul.mubr.msk.bf16.vlgmr.msra.gmra.mrb[0].mxu1 %vm724_vm3, %v790_v56 }
 0x36c   : > { %2058 = vmatpush3.bf16.msra.mxu1 %v914_v57  ;;  %2059 = vmatprep.mubr.msk.bf16.mxu1 %vm2530_vm2, %v2529_v14 }
 0x36d   : > { %2069 = vmatprep.subr.bf16.mxu1 %v2529_v14 }
 0x36e   : > { %v2299_v58 = vpop.eup %2298 }
 0x36f   : > { %v905_v59 = vsel %vm724_vm3, %v2299_v58, 0.0 }
 0x370   : > { %v2301_v60 = vpop.eup %2300  ;;  %906 = vadd.xlane.f32.xlu1 %v905_v59 }
 0x371   : > { %v911_v61 = vpack.c.bf16 %v2301_v60, %v2299_v58  ;;  %v908_v62 = vsel %vm724_vm3, %v2301_v60, 0.0 }
 0x373   : > { %2060 = vmatmul.mubr.msk.bf16.vlgmr.msra.gmra.mrb[4].mxu1 %vm724_vm3, %v911_v61 }
 0x374   : > { %909 = vadd.xlane.f32.xlu1 %v908_v62  ;;  %2071 = vmatprep.mubr.msk.bf16.mxu1 %vm2530_vm2, %v2529_v14  ;;  %v2280_v62 = vld [vmem:[%s2855_s6 + $0x10] sm:$0xff]  }
 0x375   : > { %2070 = vmatpush3.bf16.msra.mxu1 %v2278_v0 }
 0x376   : > { %2081 = vmatprep.subr.bf16.mxu1 %v2529_v14 }
 0x385   : > { %1067 = vrot.lane.b32.xlu1 %v2910_v20, %s2535_s27 }
 0x3a9   : > { %788 = vadd.xlane.f32.xlu1 %v787_v63 }
 0x3ba   : > { %1135 = vrot.lane.b32.xlu1 %v2912_v22, %s2534_s22 }
 0x3be   : > { %1239 = vrot.lane.b32.xlu1 %v2914_v23, %s2536_s30 }
 0x3f5   : > { %v786_v6 = vpop.xlane.xlu0 %785 }
 0x3f6   : > { %2302 = vrcp.f32 %v786_v6 }
 0x3fd   : > { %v907_v2 = vpop.xlane.xlu1 %906 }
 0x400   : > { %v2303_v10 = vpop.eup %2302 }
 0x401   : > { %v910_v3 = vpop.xlane.xlu1 %909 }
 0x405   : > { %v1068_v5 = vpop.permute.xlu1 %1067 }
 0x406   : > { %v1073_v32 = vsel %vm724_vm3, %v1068_v5, 0 }
 0x436   : > { %v789_v7 = vpop.xlane.xlu1 %788 }
 0x437   : > { %2304 = vrcp.f32 %v789_v7 }
 0x438   : > { %2306 = vrcp.f32 %v907_v2 }
 0x439   : > { %2308 = vrcp.f32 %v910_v3 }
 0x43a   : > { %v1136_v21 = vpop.permute.xlu1 %1135 }
 0x43e   : > { %v829_v8 = vpop.f32.mrb[0].mxu1  ;;  %v1240_v61 = vpop.permute.xlu1 %1239 }
 0x43f   : > { %v2049_v9 = vpop.f32.mrb[1].mxu1  ;;  %v838_v17 = vmul.f32 %v2303_v10, %v829_v8 }
 0x440   : > { %v832_v13 = vpop.f32.mrb[2].mxu1 }
 0x441   : > { %v2305_v15 = vpop.eup %2304  ;;  %v2050_v16 = vpop.f32.mrb[3].mxu1 }
 0x442   : > { %v839_v18 = vmul.f32 %v2305_v15, %v832_v13  ;;  %v2307_v24 = vpop.eup %2306 }
 0x443   : > { %v2309_v26 = vpop.eup %2308 }
 0x444   : > { %v840_v19 = vpack.c.bf16 %v839_v18, %v838_v17 }
 0x446   : > { %v953_v23 = vpop.f32.mrb[4].mxu1  ;;  %2072 = vmatmul.mubr.msk.bf16.vlgmr.msra.gmra.mrb[8].mxu1 %vm724_vm3, %v840_v19 }
 0x447   : > { %2082 = vmatpush3.bf16.msra.mxu1 %v1136_v21  ;;  %v2061_v25 = vpop.f32.mrb[5].mxu1  ;;  %2083 = vmatprep.mubr.msk.bf16.mxu1 %vm2530_vm2, %v2529_v14  ;;  %v962_v28 = vmul.f32 %v2307_v24, %v953_v23 }
 0x448   : > { %v956_v27 = vpop.f32.mrb[6].mxu1  ;;  %2093 = vmatprep.subr.bf16.mxu1 %v2529_v14 }
 0x449   : > { %v963_v29 = vmul.f32 %v2309_v26, %v956_v27  ;;  %v2062_v30 = vpop.f32.mrb[7].mxu1 }
 0x44b   : > { %v964_v31 = vpack.c.bf16 %v963_v29, %v962_v28 }
 0x44d   : > { %2066 = vmatmul.mubr.msk.bf16.vlgmr.msra.gmra.mrb[12].mxu0 %vm724_vm3, %v964_v31 }
 0x44e   : > { %2076 = vmatpush3.bf16.xpose.msra.mxu0 %v1073_v32  ;;  %2077 = vmatprep.mubr.msk.bf16.mxu0 %vm2530_vm2, %v2529_v14 }
 0x44f   : > { %2087 = vmatprep.subr.bf16.mxu0 %v2529_v14 }
 0x455   : > { %2078 = vmatmul.mubr.msk.bf16.vlgmr.msra.gmra.mrb[16].mxu0 %vm724_vm3, %v1066_v4 }
 0x456   : > { %2089 = vmatprep.mubr.msk.bf16.mxu0 %vm2530_vm2, %v2529_v14  ;;  %2088 = vmatpush3.bf16.msra.mxu0 %v2280_v62 }
 0x457   : > { %2099 = vmatprep.subr.bf16.mxu0 %v2529_v14 }
 0x519   : > { %v1058_v33 = vpop.f32.mrb[8].mxu1 }
 0x51a   : > { %v2073_v34 = vpop.f32.mrb[9].mxu1 }
 0x51b   : > { %v1061_v35 = vpop.f32.mrb[10].mxu1 }
 0x51c   : > { %v2074_v36 = vpop.f32.mrb[11].mxu1 }
 0x520   : > { %v1008_v37 = vpop.f32.mrb[12].mxu0 }
 0x521   : > { %v2973_v38 = vadd.f32 %v1058_v33, %v1008_v37  ;;  %v2067_v39 = vpop.f32.mrb[13].mxu0 }
 0x522   : > { %v1011_v40 = vpop.f32.mrb[14].mxu0  ;;  %v2281_v39 = vld [vmem:[%s2855_s6 + $0x18] sm:$0xff]  }
 0x523   : > { %v2975_v41 = vadd.f32 %v1061_v35, %v1011_v40  ;;  %v2068_v42 = vpop.f32.mrb[15].mxu0 }
 0x528   : > { %v1109_v43 = vpop.f32.mrb[16].mxu0 }
 0x529   : > { %v2079_v44 = vpop.f32.mrb[17].mxu0  ;;  %v1116_v45 = vsel %vm724_vm3, %v1109_v43, -inf }
 0x52a   : > { %1117 = vmax.xlane.f32.xlu0 %v1116_v45  ;;  %v1112_v46 = vpop.f32.mrb[18].mxu0 }
 0x52b   : > { %v2080_v47 = vpop.f32.mrb[19].mxu0  ;;  %v1119_v48 = vsel %vm724_vm3, %v1112_v46, -inf }
 0x52e   : > { %1120 = vmax.xlane.f32.xlu0 %v1119_v48 }
 0x544   : > { %1241 = vrot.lane.b32.xlu0 %v2910_v20, %s2537_s14 }
 0x5b7   : > { %v1118_v49 = vpop.xlane.xlu0 %1117 }
 0x5b8   : > { %v1122_v50 = vsub.f32 %v1109_v43, %v1118_v49 }
 0x5ba   : > { %v1124_v51 = vmul.f32 1.442695, %v1122_v50 }
 0x5bb   : > { %v1121_v52 = vpop.xlane.xlu0 %1120 }
 0x5bc   : > { %2310 = vpow2.f32 %v1124_v51  ;;  %v1123_v53 = vsub.f32 %v1112_v46, %v1121_v52 }
 0x5be   : > { %v1126_v54 = vmul.f32 1.442695, %v1123_v53 }
 0x5bf   : > { %v1242_v58 = vpop.permute.xlu0 %1241 }
 0x5c0   : > { %2312 = vpow2.f32 %v1126_v54  ;;  %v1247_v20 = vsel %vm724_vm3, %v1242_v58, 0 }
 0x5c6   : > { %v2311_v55 = vpop.eup %2310 }
 0x5c7   : > { %v1128_v56 = vsel %vm724_vm3, %v2311_v55, 0.0 }
 0x5c8   : > { %1129 = vadd.xlane.f32.xlu1 %v1128_v56 }
 0x5ca   : > { %v2313_v57 = vpop.eup %2312 }
 0x5cb   : > { %v1131_v59 = vsel %vm724_vm3, %v2313_v57, 0.0  ;;  %v1134_v60 = vpack.c.bf16 %v2313_v57, %v2311_v55 }
 0x5cc   : > { %1132 = vadd.xlane.f32.xlu0 %v1131_v59 }
 0x5cd   : > { %2084 = vmatmul.mubr.msk.bf16.vlgmr.msra.gmra.mrb[12].mxu1 %vm724_vm3, %v1134_v60 }
 0x5ce   : > { %2094 = vmatpush3.bf16.xpose.msra.mxu1 %v1247_v20  ;;  %2095 = vmatprep.mubr.msk.bf16.mxu1 %vm2530_vm2, %v2529_v14 }
 0x5cf   : > { %2105 = vmatprep.subr.bf16.mxu1 %v2529_v14 }
 0x5d5   : > { %2096 = vmatmul.mubr.msk.bf16.vlgmr.msra.gmra.mrb[16].mxu1 %vm724_vm3, %v1240_v61 }
 0x5d6   : > { %2107 = vmatprep.mubr.msk.bf16.mxu1 %vm2530_vm2, %v2529_v14  ;;  %2106 = vmatpush3.bf16.msra.mxu1 %v2281_v39 }
 0x5d7   : > { %2123 = vmatprep.subr.bf16.mxu1 %v2529_v14 }
 0x655   : > { %v1130_v63 = vpop.xlane.xlu1 %1129 }
 0x656   : > { %2314 = vrcp.f32 %v1130_v63 }
 0x659   : > { %v1133_v0 = vpop.xlane.xlu0 %1132 }
 0x65a   : > { %2316 = vrcp.f32 %v1133_v0 }
 0x660   : > { %v2315_v2 = vpop.eup %2314 }
 0x664   : > { %v2317_v4 = vpop.eup %2316 }
 0x6a0   : > { %v1175_v1 = vpop.f32.mrb[12].mxu1 }
 0x6a1   : > { %v2085_v3 = vpop.f32.mrb[13].mxu1  ;;  %v1184_v6 = vmul.f32 %v2315_v2, %v1175_v1 }
 0x6a2   : > { %v1178_v5 = vpop.f32.mrb[14].mxu1  ;;  %v2282_v3 = vld [vmem:[%s2835_s11] sm:$0xff]  }
 0x6a3   : > { %v1185_v7 = vmul.f32 %v2317_v4, %v1178_v5  ;;  %v2086_v8 = vpop.f32.mrb[15].mxu1  ;;  %v2283_v4 = vld [vmem:[%s2835_s11 + $0x8] sm:$0xff]   ;;  %v2284_v5 = vld [vmem:[%s2835_s11 + $0x10] sm:$0xff]  }
 0x6a4   : > { %v2287_v8 = vld [vmem:[%s2872_s19 + $0x8] sm:$0xff]  }
 0x6a5   : > { %v1186_v9 = vpack.c.bf16 %v1185_v7, %v1184_v6  ;;  %v2285_v6 = vld [vmem:[%s2835_s11 + $0x18] sm:$0xff]   ;;  %v2286_v7 = vld [vmem:[%s2872_s19] sm:$0xff]  }
 0x6a7   : > { %2090 = vmatmul.mubr.msk.bf16.vlgmr.msra.gmra.mrb[20].mxu0 %vm724_vm3, %v1186_v9  ;;  %v2288_v9 = vld [vmem:[%s2872_s19 + $0x10] sm:$0xff]  }
 0x6a8   : > { %v1283_v10 = vpop.f32.mrb[16].mxu1  ;;  %2101 = vmatprep.mubr.msk.bf16.mxu0 %vm2530_vm2, %v2529_v14 }
 0x6a9   : > { %v2097_v13 = vpop.f32.mrb[17].mxu1  ;;  %v1290_v15 = vsel %vm724_vm3, %v1283_v10, -inf }
 0x6aa   : > { %1291 = vmax.xlane.f32.xlu0 %v1290_v15  ;;  %v1286_v16 = vpop.f32.mrb[18].mxu1  ;;  %v2290_v13 = vld [vmem:[%s2872_s19 + $0x20] sm:$0xff]   ;;  %v2291_v15 = vld [vmem:[%s2872_s19 + $0x28] sm:$0xff]  }
 0x6ab   : > { %v2098_v17 = vpop.f32.mrb[19].mxu1  ;;  %v1293_v18 = vsel %vm724_vm3, %v1286_v16, -inf }
 0x6ac   : > { %1294 = vmax.xlane.f32.xlu1 %v1293_v18 }
 0x6c0   : > { %1309 = vrot.lane.b32.xlu0 %v2912_v22, %s2536_s30 }
 0x737   : > { %v1292_v19 = vpop.xlane.xlu0 %1291 }
 0x738   : > { %v1296_v21 = vsub.f32 %v1283_v10, %v1292_v19  ;;  %v2289_v10 = vld [vmem:[%s2872_s19 + $0x18] sm:$0xff]  }
 0x739   : > { %v1295_v23 = vpop.xlane.xlu1 %1294 }
 0x73a   : > { %v1298_v24 = vmul.f32 1.442695, %v1296_v21  ;;  %v1297_v25 = vsub.f32 %v1286_v16, %v1295_v23 }
 0x73b   : > { %v1310_v26 = vpop.permute.xlu0 %1309 }
 0x73c   : > { %2318 = vpow2.f32 %v1298_v24  ;;  %v1300_v27 = vmul.f32 1.442695, %v1297_v25  ;;  %2100 = vmatpush3.bf16.msra.mxu0 %v1310_v26  ;;  %v1970_v26 = vld [vmem:[%s3237_s15] ss:$0 sm:$0xff] }
 0x73d   : > { %2111 = vmatprep.subr.bf16.mxu0 %v2529_v14 }
 0x73e   : > { %2320 = vpow2.f32 %v1300_v27 }
 0x746   : > { %v2319_v28 = vpop.eup %2318 }
 0x747   : > { %v1302_v29 = vsel %vm724_vm3, %v2319_v28, 0.0 }
 0x748   : > { %v2321_v30 = vpop.eup %2320  ;;  %1303 = vadd.xlane.f32.xlu1 %v1302_v29 }
 0x749   : > { %v1308_v31 = vpack.c.bf16 %v2321_v30, %v2319_v28  ;;  %v1305_v22 = vsel %vm724_vm3, %v2321_v30, 0.0  ;;  %v1971_v30 = vld [vmem:[%s3238_s28] ss:$0 sm:$0xff] }
 0x74b   : > { %2102 = vmatmul.mubr.msk.bf16.vlgmr.msra.gmra.mrb[24].mxu0 %vm724_vm3, %v1308_v31 }
 0x74c   : > { %1306 = vadd.xlane.f32.xlu1 %v1305_v22  ;;  %2119 = vmatprep.mubr.msk.bf16.mxu0 %vm2530_vm2, %v2529_v14 }
 0x74d   : > { %2112 = vmatpush3.bf16.msra.mxu0 %v2282_v3 }
 0x74e   : > { %2113 = vmatprep.subr.bf16.mxu0 %v2529_v14 }
 0x751   : > { %2114 = vmatpush3.bf16.msra.mxu0 %v2283_v4 }
 0x752   : > { %2115 = vmatprep.subr.bf16.mxu0 %v2529_v14 }
 0x755   : > { %2116 = vmatpush3.bf16.msra.mxu0 %v2284_v5 }
 0x756   : > { %2117 = vmatprep.subr.bf16.mxu0 %v2529_v14 }
 0x759   : > { %2118 = vmatpush3.bf16.msra.mxu0 %v2285_v6  ;;  %v1987_v6 = vld [vmem:[%s597_s5] ss:$0 sm:$0xff] }
 0x77a   : > { %v1230_v32 = vpop.f32.mrb[20].mxu0 }
 0x77b   : > { %v1237_v33 = vadd.f32 %v1230_v32, %v2973_v38  ;;  %v2091_v34 = vpop.f32.mrb[21].mxu0 }
 0x77c   : > { %v1233_v35 = vpop.f32.mrb[22].mxu0  ;;  %v2292_v34 = vld [vmem:[%s2872_s19 + $0x30] sm:$0xff]  }
 0x77d   : > { %v1238_v36 = vadd.f32 %v1233_v35, %v2975_v41  ;;  %v2092_v37 = vpop.f32.mrb[23].mxu0  ;;  %v2293_v35 = vld [vmem:[%s2872_s19 + $0x38] sm:$0xff]  }
 0x7d5   : > { %v1304_v40 = vpop.xlane.xlu1 %1303 }
 0x7d6   : > { %2322 = vrcp.f32 %v1304_v40 }
 0x7d9   : > { %v1307_v42 = vpop.xlane.xlu1 %1306 }
 0x7da   : > { %2324 = vrcp.f32 %v1307_v42 }
 0x7e0   : > { %v2323_v44 = vpop.eup %2322 }
 0x7e4   : > { %v2325_v46 = vpop.eup %2324 }
 0x81e   : > { %v1349_v43 = vpop.f32.mrb[24].mxu0 }
 0x81f   : > { %v2103_v45 = vpop.f32.mrb[25].mxu0  ;;  %v1358_v48 = vmul.f32 %v2323_v44, %v1349_v43 }
 0x820   : > { %v1352_v47 = vpop.f32.mrb[26].mxu0 }
 0x821   : > { %v1359_v38 = vmul.f32 %v2325_v46, %v1352_v47  ;;  %v2104_v49 = vpop.f32.mrb[27].mxu0 }
 0x823   : > { %v1360_v50 = vpack.c.bf16 %v1359_v38, %v1358_v48 }
 0x825   : > { %2108 = vmatmul.mubr.msk.bf16.vlgmr.msra.gmra.mrb[20].mxu1 %vm724_vm3, %v1360_v50 }
 0x826   : > { %2139 = vmatprep.mubr.msk.bf16.mxu1 %vm2530_vm2, %v2529_v14  ;;  %2124 = vmatpush3.bf16.msra.mxu1 %v2286_v7 }
 0x827   : > { %2125 = vmatprep.subr.bf16.mxu1 %v2529_v14 }
 0x82a   : > { %2126 = vmatpush3.bf16.msra.mxu1 %v2287_v8  ;;  %v1988_v8 = vld [vmem:[%s600_s25] ss:$0 sm:$0xff] }
 0x82b   : > { %2127 = vmatprep.subr.bf16.mxu1 %v2529_v14 }
 0x82e   : > { %2128 = vmatpush3.bf16.msra.mxu1 %v2288_v9 }
 0x82f   : > { %2129 = vmatprep.subr.bf16.mxu1 %v2529_v14 }
 0x832   : > { %2130 = vmatpush3.bf16.msra.mxu1 %v2289_v10 }
 0x833   : > { %2131 = vmatprep.subr.bf16.mxu1 %v2529_v14 }
 0x836   : > { %2132 = vmatpush3.bf16.msra.mxu1 %v2290_v13 }
 0x837   : > { %2133 = vmatprep.subr.bf16.mxu1 %v2529_v14 }
 0x83a   : > { %2134 = vmatpush3.bf16.msra.mxu1 %v2291_v15 }
 0x83b   : > { %2135 = vmatprep.subr.bf16.mxu1 %v2529_v14 }
 0x83e   : > { %2136 = vmatpush3.bf16.msra.mxu1 %v2292_v34 }
 0x83f   : > { %2137 = vmatprep.subr.bf16.mxu1 %v2529_v14  ;;  %v1978_v14 = vld [vmem:[%s594_s2] ss:$0 sm:$0xff] }
 0x842   : > { %2138 = vmatpush3.bf16.msra.mxu1 %v2293_v35 }
 0x8f8   : > { %v1404_v41 = vpop.f32.mrb[20].mxu1 }
 0x8f9   : > { %v1411_v51 = vadd.f32 %v1404_v41, %v1237_v33  ;;  %v2109_v52 = vpop.f32.mrb[21].mxu1 }
 0x8fa   : > { %v1407_v53 = vpop.f32.mrb[22].mxu1 }
 0x8fb   : > { %v1412_v54 = vadd.f32 %v1407_v53, %v1238_v36  ;;  %v2110_v55 = vpop.f32.mrb[23].mxu1  ;;  %v1413_v56 = vadd.f32 %v1411_v51, %v2897_v11  ;;  %v1972_v36 = vld [vmem:[%s586_s24] ss:$0 sm:$0xff] }
 0x8fd   : > { %v1417_v57 = vsel %vm662_vm1, %v1413_v56, 0.0  ;;  %v1414_v58 = vadd.f32 %v1412_v54, %v2899_v12 }
 0x8fe   : > { %1418 = vadd.xlane.f32.xlu1 %v1417_v57 }
 0x8ff   : > { %v1420_v59 = vsel %vm662_vm1, %v1414_v58, 0.0 }
 0x902   : > { %1421 = vadd.xlane.f32.xlu1 %v1420_v59 }
 0x98b   : > { %v1419_v60 = vpop.xlane.xlu1 %1418 }
 0x98c   : > { %v1424_v20 = vmul.f32 0.015625, %v1419_v60 }
 0x98e   : > { %v1426_v61 = vsub.f32 %v1413_v56, %v1424_v20 }
 0x98f   : > { %v1422_v62 = vpop.xlane.xlu1 %1421 }
 0x990   : > { %v1425_v63 = vmul.f32 0.015625, %v1422_v62  ;;  %v1428_v0 = vmul.f32 %v1426_v61, %v1426_v61 }
 0x992   : > { %v1427_v1 = vsub.f32 %v1414_v58, %v1425_v63  ;;  %v1430_v11 = vsel %vm662_vm1, %v1428_v0, 0.0 }
 0x993   : > { %1431 = vadd.xlane.f32.xlu1 %v1430_v11 }
 0x994   : > { %v1429_v12 = vmul.f32 %v1427_v1, %v1427_v1 }
 0x996   : > { %v1433_v2 = vsel %vm662_vm1, %v1429_v12, 0.0 }
 0x997   : > { %1434 = vadd.xlane.f32.xlu1 %v1433_v2 }
 0xa20   : > { %v1432_v16 = vpop.xlane.xlu1 %1431 }
 0xa21   : > { %v1436_v17 = vmul.f32 0.015625, %v1432_v16 }
 0xa23   : > { %v1438_v18 = vadd.f32 1e-06, %v1436_v17 }
 0xa24   : > { %v1435_v19 = vpop.xlane.xlu1 %1434 }
 0xa25   : > { %2326 = vrsqrt.f32 %v1438_v18  ;;  %v1437_v21 = vmul.f32 0.015625, %v1435_v19 }
 0xa27   : > { %v1439_v23 = vadd.f32 1e-06, %v1437_v21 }
 0xa29   : > { %2328 = vrsqrt.f32 %v1439_v23 }
 0xa2f   : > { %v2327_v24 = vpop.eup %2326 }
 0xa30   : > { %v1442_v25 = vmul.f32 %v2327_v24, %v1426_v61 }
 0xa32   : > { %v1450_v28 = vmul.f32 %v1970_v26, %v1442_v25 }
 0xa33   : > { %v2329_v27 = vpop.eup %2328 }
 0xa34   : > { %v1443_v29 = vmul.f32 %v2329_v27, %v1427_v1  ;;  %v1458_v22 = vadd.f32 %v1971_v30, %v1450_v28 }
 0xa36   : > { %v1451_v31 = vmul.f32 %v1970_v26, %v1443_v29 }
 0xa38   : > { %v1459_v32 = vadd.f32 %v1971_v30, %v1451_v31 }
 0xa3a   : > { %v1486_v33 = vpack.c.bf16 %v1459_v32, %v1458_v22 }
 0xa3c   : > { %2120 = vmatmul.mubr.msk.bf16.vlgmr.msra.gmra.mrb[28].mxu0 %vm662_vm1, %v1486_v33 }
 0xb0f   : > { %v1554_v37 = vpop.f32.mrb[28].mxu0 }
 0xb10   : > { %v1555_v39 = vadd.f32 %v1972_v36, %v1554_v37  ;;  %v2121_v40 = vpop.f32.mrb[29].mxu0 }
 0xb11   : > { %v1557_v42 = vpop.f32.mrb[30].mxu0 }
 0xb12   : > { %v1558_v43 = vadd.f32 %v1972_v36, %v1557_v42  ;;  %v2122_v44 = vpop.f32.mrb[31].mxu0  ;;  %v1561_v45 = vmax.f32 %v1555_v39, 0.0 }
 0xb14   : > { %v1562_v46 = vmax.f32 %v1558_v43, 0.0 }
 0xb16   : > { %v1563_v47 = vpack.c.bf16 %v1562_v46, %v1561_v45 }
 0xb18   : > { %2140 = vmatmul.mubr.bf16.vlgmr.msra.gmra.mrb[24].mxu1 %v1563_v47 }
 0xbeb   : > { %v1652_v48 = vpop.f32.mrb[24].mxu1 }
 0xbec   : > { %v1653_v38 = vadd.f32 %v1978_v14, %v1652_v48  ;;  %v2141_v49 = vpop.f32.mrb[25].mxu1 }
 0xbed   : > { %v1655_v50 = vpop.f32.mrb[26].mxu1 }
 0xbee   : > { %v1656_v41 = vadd.f32 %v1978_v14, %v1655_v50  ;;  %v2142_v51 = vpop.f32.mrb[27].mxu1  ;;  %v1659_v52 = vadd.f32 %v1653_v38, %v1458_v22 }
 0xbf0   : > { %v1663_v53 = vsel %vm662_vm1, %v1659_v52, 0.0  ;;  %v1660_v54 = vadd.f32 %v1656_v41, %v1459_v32 }
 0xbf1   : > { %1664 = vadd.xlane.f32.xlu0 %v1663_v53 }
 0xbf2   : > { %v1666_v55 = vsel %vm662_vm1, %v1660_v54, 0.0 }
 0xbf3   : > { %1667 = vadd.xlane.f32.xlu1 %v1666_v55 }
 0xc7e   : > { %v1665_v56 = vpop.xlane.xlu0 %1664 }
 0xc7f   : > { %v1669_v57 = vmul.f32 0.015625, %v1665_v56 }
 0xc80   : > { %v1668_v58 = vpop.xlane.xlu1 %1667 }
 0xc81   : > { %v1671_v59 = vsub.f32 %v1659_v52, %v1669_v57  ;;  %v1670_v60 = vmul.f32 0.015625, %v1668_v58 }
 0xc83   : > { %v1672_v20 = vsub.f32 %v1660_v54, %v1670_v60  ;;  %v1673_v61 = vmul.f32 %v1671_v59, %v1671_v59 }
 0xc85   : > { %v1675_v62 = vsel %vm662_vm1, %v1673_v61, 0.0  ;;  %v1674_v63 = vmul.f32 %v1672_v20, %v1672_v20 }
 0xc86   : > { %1676 = vadd.xlane.f32.xlu1 %v1675_v62 }
 0xc87   : > { %v1678_v0 = vsel %vm662_vm1, %v1674_v63, 0.0 }
 0xc8a   : > { %1679 = vadd.xlane.f32.xlu1 %v1678_v0 }
 0xd13   : > { %v1677_v1 = vpop.xlane.xlu1 %1676 }
 0xd14   : > { %v1681_v11 = vmul.f32 0.015625, %v1677_v1 }
 0xd16   : > { %v1683_v12 = vadd.f32 1e-06, %v1681_v11 }
 0xd17   : > { %v1680_v2 = vpop.xlane.xlu1 %1679 }
 0xd18   : > { %2330 = vrsqrt.f32 %v1683_v12  ;;  %v1682_v3 = vmul.f32 0.015625, %v1680_v2 }
 0xd1a   : > { %v1684_v4 = vadd.f32 1e-06, %v1682_v3 }
 0xd1c   : > { %2332 = vrsqrt.f32 %v1684_v4 }
 0xd22   : > { %v2331_v5 = vpop.eup %2330 }
 0xd23   : > { %v1687_v7 = vmul.f32 %v2331_v5, %v1671_v59 }
 0xd25   : > { %v1695_v9 = vmul.f32 %v1987_v6, %v1687_v7 }
 0xd26   : > { %v2333_v10 = vpop.eup %2332 }
 0xd27   : > { %v1703_v13 = vadd.f32 %v1988_v8, %v1695_v9  ;;  %v1688_v15 = vmul.f32 %v2333_v10, %v1672_v20  ;;  %1710 = sbr.rel (%p1989_p13) target bundleno = 3374 (0xd2e), region = 80 }
 0xd29   : > { %1705 = vst.msk [vmem:[#allocation2] sm:$0xff] %vm662_vm1, %v1703_v13  ;;  %v1696_v16 = vmul.f32 %v1987_v6, %v1688_v15  ;;  %1711 = vst.msk [vmem:[%s2886_s20] sm:$0xff] (!%p1989_p13), %vm662_vm1, %v1703_v13 }
 0xd2b   : > { %v1704_v17 = vadd.f32 %v1988_v8, %v1696_v16 }
 0xd2d   : > { %1706 = vst.msk [vmem:[#allocation2 + $0x8] sm:$0xff] %vm662_vm1, %v1704_v17  ;;  %1712 = vst.msk [vmem:[%s2886_s20 + $0x8] sm:$0xff] (!%p1989_p13), %vm662_vm1, %v1704_v17 }
 0xd2e PF: > { %s3243_s5 = sld [smem:[#allocation17_spill]]  ;;  %s3244_s25 = sld [smem:[#allocation27_spill]] }
 0xd2f   : > { %s3245_s0 = sld [smem:[#allocation21_spill]]  ;;  %s3246_s27 = sld [smem:[#allocation37_spill]] }
 0xd30   : > { %s1727_s10 = sshll.u32 %s2886_s20, 4  ;;  %s2538_s15 = smov [#allocation8]   ;;  %s3089_s10 = int_to_ptr.vmem [resolvable:$true] %s1727_s10 }
 0xd31   : > { %s2394_s11 = scalar_lea.vmem %s3089_s10, 256  ;;  %s2398_s16 = sshll.u32 %s2538_s15, 4  ;;  %s2399_s16 = int_to_ptr.vmem [resolvable:$false] %s2398_s16 }
 0xd32   : > { %p2395_p12 = scmp.ne.s32.totalorder %s3089_s10, %s2394_s11  ;;  %s2400_s6 = scalar_lea.vmem %s2399_s16, 512 }
 0xd33   : > { %p2401_p1 = scmp.lt.s32.totalorder %s3089_s10, %s2399_s16  ;;  %p2402_p9 = scmp.lt.s32.totalorder %s2400_s6, %s2394_s11 }
 0xd34   : > { %s2000_s18 = sshll.u32 %s3243_s5, 8  ;;  %s1714_s23 = scalar_lea.sflag [#allocation5], %s3244_s25 }
 0xd35   : > { %s3247_s30 = smov %s3246_s27  ;;  %s3086_s14 = scalar_lea.hbm %s3246_s27, %s2000_s18 }
 0xd36   : > { %p3248_p0 = scmp.ne.s32.totalorder %s3245_s0, 0  ;;  %p2403_p2 = por %p2402_p9, %p2401_p1 }
 0xd38   : > { %p2396_p5 = pnand %p2395_p12, %p3248_p0 }
 0xd3a   : > { %p2397_p3 = pneg %p2396_p5 }
 0xd3c   : > { %p2404_p11 = pnand %p2403_p2, %p2397_p3 }
 0xd3e   : > { %2407 = shalt.err (!%p2404_p11)
}
 0xd3f   : > { %s2408_s20 = scalar_lea.hbm %s3086_s14, 256  ;;  %s2412_s12 = scalar_lea.hbm %s3247_s30, 512 }
 0xd40   : > { %p2409_p7 = scmp.ne.s32.totalorder %s3086_s14, %s2408_s20  ;;  %p2413_p10 = scmp.lt.u32.totalorder %s3086_s14, %s3247_s30 }
 0xd41   : > { %p2414_p6 = scmp.lt.u32.totalorder %s2412_s12, %s2408_s20  ;;  %p2416_p12 = scmp.lt.u32.totalorder %s2408_s20, %s3086_s14 }
 0xd42   : > { %p2410_p4 = pnand %p2409_p7, %p3248_p0 }
 0xd43   : > { %p2415_p13 = por %p2414_p6, %p2413_p10 }
 0xd44   : > { %p2411_p8 = pneg %p2410_p4 }
 0xd45   : > { %p2417_p5 = por %p2416_p12, %p2415_p13 }
 0xd47   : > { %p2418_p3 = pnand %p2417_p5, %p2411_p8 }
 0xd49   : > { %2421 = shalt.err (!%p2418_p3)
}
 0xd4a   : > { %s2539_s13 = smov 128   ;;  %s2540_s29 = smov 8  }
 0xd4b   : > { %2147 = dma.vmem_to_hbm [thread:$0]  (%p3248_p0), %s3089_s10, 256, %s3086_s14, %s1714_s23, %s2539_s13, %s2539_s13, %s2540_s29  }
 0xd4c PF: > { %s3249_s2 = sld [smem:[#allocation20_spill]]  ;;  %s3250_s19 = sld [smem:[#allocation14_spill]] }
 0xd4d   : > { %s3251_s24 = sld [smem:[#allocation22_spill]] }
 0xd52   : > { %p2161_p1 = scmp.ge.s32.totalorder %s3249_s2, 2  ;;  %s1742_s26 = sand.u32 1, %s3250_s19  }
 0xd53   : > { %p3252_p9 = scmp.ne.s32.totalorder %s3251_s24, 0  ;;  %s1743_s9 = scalar_lea.sflag [#allocation5], %s1742_s26 }
 0xd55   : > { %p2157_p2 = pnand %p2161_p1, %p3252_p9 }
 0xd57   : > { %2475 = dma.done.wait (!%p2157_p2), %s1743_s9, 256  }
 0xd58   : > { %2477 = vsyncadd (!%p2157_p2), %s1743_s9, 4294967040  ;;  %s30_s27 = sadd.s32 1, %s3249_s2   ;;  %s3253_s17 = sld [smem:[#allocation12_spill]] }
 0xd59   : > { %p27_p11 = scmp.ge.s32.totalorder %s30_s27, 6   ;;  %s3254_s18 = sld [smem:[#allocation13_spill]] }
 0xd5a   : > { %s3255_s19 = sld [smem:[#allocation25_spill]]  ;;  %s3256_s20 = sld [smem:[#allocation15_spill]] }
 0xd5b   : > { %s3257_s21 = sld [smem:[#allocation16_spill]]  ;;  %s3258_s22 = sld [smem:[#allocation26_spill]] }
 0xd5c   : > { %s3259_s23 = sld [smem:[#allocation18_spill]]  ;;  %s3260_s24 = sld [smem:[#allocation19_spill]] }
 0xd5d   : > { %s3261_s25 = sld [smem:[#allocation23_spill]]  ;;  %s3262_s26 = sld [smem:[#allocation24_spill]] }
 0xd5e   :  { %29 = sbr.rel (!%p27_p11) target bundleno = 22 (0x16), region = 157 }
 0xd65   :  { %1748 = vsyncpa [#allocation4], 1 }
 0xd66   :  { %1750 = vsyncpa [#allocation4 + $0x1], 1 }
 0xd67   :  { %1751 = vsyncpa [#allocation7], 1 }
 0xd68   :  { %1753 = vsyncpa [#allocation7 + $0x1], 1 }
 0xd69   :  { %1754 = vsyncpa [#allocation5], 1 }
 0xd6a   :  { %1756 = vsyncpa [#allocation5 + $0x1], 1 }

</bundles_post_ra>
